<compile_context>
chip_gen: v7x
topology: tpu7x:2x2x1
jax: 0.10.0
libtpu: 0.0.40
codegen_flags: <defaults>
</compile_context>

<pallas_src>
import functools

import numpy as np
import jax
import jax.numpy as jnp
from jax import lax
from jax.experimental import pallas as pl
from jax.experimental.pallas import tpu as pltpu

LEAKY_SLOPE = 0.1  # nn.LeakyReLU(negative_slope=0.1)

# Contract the last (event) axis of both operands: (1, chunk) x (Sp, chunk) -> (1, Sp).
# Same "q @ k^T" dimension-number pattern used by the official Pallas TPU flash kernels.
_CONTRACT_EVENTS = (((1,), (1,)), ((), ()))


def _leaky_relu(x):
    return jnp.where(x > 0, x, LEAKY_SLOPE * x)


def quantization_kernel(cb_ref,                 # scalar prefetch: (n_chunks,) batch id per chunk
                        t_ref, idx_ref,         # (1, 1, chunk) event t / slab-relative voxel idx
                        w1t_ref, b1t_ref, w2t_ref, b2t_ref, w3t_ref, b3_ref,
                        vox_ref,                # (1, 1, Sp) resident per-batch voxel slab
                        *, C, H, inv_denom):
    c = pl.program_id(0)            # event-chunk axis (outer)
    i = pl.program_id(1)            # time-bin axis (inner, reduction)
    nc = pl.num_programs(0)

    slab = cb_ref[c]
    prev = cb_ref[jnp.maximum(c - 1, 0)]
    nxt = cb_ref[jnp.minimum(c + 1, nc - 1)]
    is_first_chunk = jnp.logical_or(c == 0, slab != prev)
    is_last_chunk = jnp.logical_or(c == nc - 1, slab != nxt)

    # Zero this batch's slab accumulator the first time its block becomes resident.
    @pl.when(jnp.logical_and(i == 0, is_first_chunk))
    def _():
        vox_ref[...] = jnp.zeros_like(vox_ref)

    t = t_ref[0]                                          # (1, chunk), events on lanes
    x_in = t - i.astype(jnp.float32) * inv_denom          # t - i_bin / (C - 1)

    # --- ValueLayer MLP, transposed (events on lanes, hidden on sublanes) -------------------
    # layer 1 (K=1): VPU broadcast instead of a 1/128-utilized MXU matmul.
    h = _leaky_relu(w1t_ref[...] * x_in + b1t_ref[...])                         # (Hd, chunk)
    # layer 2: real 128x128 matmul on the MXU, f32 accumulation.
    h = _leaky_relu(jnp.dot(w2t_ref[...], h, preferred_element_type=jnp.float32)
                    + b2t_ref[...])                                             # (Hd, chunk)
    # layer 3 (M=1): VPU multiply + sublane reduce (keeps the MXU free for the scatter).
    v = jnp.sum(w3t_ref[...] * h, axis=0, keepdims=True) + b3_ref[...]          # (1, chunk)

    values = t * v                         # values = t * value_layer(t - i/(C-1))

    # --- scatter-add into the per-batch voxel slab ------------------------------------------
    idx = idx_ref[0] + H * i               # (1, chunk) int32, slab-relative voxel id
    Sp = vox_ref.shape[2]
    vox_iota = lax.broadcasted_iota(jnp.int32, (Sp, idx.shape[1]), 0)   # voxel id on sublanes
    onehot = jnp.where(vox_iota == idx, 1.0, 0.0).astype(jnp.float32)   # fused cmp + select
    # Event-axis reduction on the MXU: (1, chunk) x (Sp, chunk)^T -> (1, Sp), lane-dense.
    contrib = lax.dot_general(values, onehot, _CONTRACT_EVENTS,
                              preferred_element_type=jnp.float32)
    vox_ref[0] += contrib

    # Final /100 exactly once, right before this batch's block is written back.
    @pl.when(jnp.logical_and(i == C - 1, is_last_chunk))
    def _():
        vox_ref[...] = vox_ref[...] / 100.0


def quantization_layer_forward(events, params, dim, chunk=1024):
    """QuantizationLayer.forward.

    events: (N, 4) float32 rows [x, t, p, b] (matching `x, t, p, b = events.t()`).
    params: (w1 (1,HID), b1 (HID,), w2 (HID,HID), b2 (HID,), w3 (HID,1), b3 (1,)) in row-vector
            math orientation (h = x @ w1 + b1, ...).
    dim:    (C, H).   chunk: events per grid step (multiple of 128; 1024-4096 for large N).

    NOTE: like torch's `int((1 + events[-1, -1]).item())`, B and the per-batch grouping are
    derived host-side (np.asarray forces a sync); this wrapper is intentionally not jit-traceable.
    """
    C, H = dim
    assert chunk % 128 == 0 and chunk >= 128

    ev = np.asarray(events, np.float32)
    B = int(ev[-1, -1]) + 1                      # int((1 + events[-1,-1]).item())
    S = 2 * C * H                                # voxels per batch slab
    Sp = int(np.ceil(S / 128) * 128)             # lane-padded slab width

    # Integer index math (no float round-trip): slab-relative idx = (x-1) + C*H*p; + H*i in-kernel.
    x = ev[:, 0].astype(np.int32)
    t = ev[:, 1].astype(np.float32)
    p = ev[:, 2].astype(np.int32)
    b = ev[:, 3].astype(np.int32)
    idx_rel = (x - 1) + C * H * p

    # Group events by batch, pad each batch to a whole number of chunks.
    # Padded events get t = 0 (=> value 0) and idx = Sp (matches no lane): they contribute nothing.
    t_rows, idx_rows, chunk_batch = [], [], []
    for bi in range(B):
        sel = b == bi
        tb, ib = t[sel], idx_rel[sel]
        n = tb.shape[0]
        n_pad = int(np.ceil(max(n, 1) / chunk) * chunk)
        tb = np.pad(tb, (0, n_pad - n))
        ib = np.pad(ib, (0, n_pad - n), constant_values=Sp)
        t_rows.append(tb.reshape(-1, 1, chunk))
        idx_rows.append(ib.reshape(-1, 1, chunk))
        chunk_batch.append(np.full((n_pad // chunk,), bi, np.int32))
    t_arr = jnp.asarray(np.concatenate(t_rows, axis=0))        # (n_chunks, 1, chunk) f32
    idx_arr = jnp.asarray(np.concatenate(idx_rows, axis=0))    # (n_chunks, 1, chunk) i32
    cb = jnp.asarray(np.concatenate(chunk_batch, axis=0))      # (n_chunks,)          i32
    n_chunks = int(t_arr.shape[0])

    # MLP params: transpose + zero-pad the hidden width to a lane multiple (100 -> 128).
    w1, b1, w2, b2, w3, b3 = [np.asarray(q, np.float32) for q in params]
    HID = w1.shape[1]
    Hd = int(np.ceil(HID / 128) * 128)

    def col(vec):
        out = np.zeros((Hd, 1), np.float32)
        out[:HID, 0] = vec
        return out

    w1t = col(w1[0])                                   # (Hd, 1)
    b1t = col(b1)
    w2t = np.zeros((Hd, Hd), np.float32)
    w2t[:HID, :HID] = w2.T                             # h2 = w2t @ h1
    b2t = col(b2)
    w3t = col(w3[:, 0])
    b3c = b3.reshape(1, 1).astype(np.float32)
    w1t, b1t, w2t, b2t, w3t, b3c = map(jnp.asarray, (w1t, b1t, w2t, b2t, w3t, b3c))

    kernel = functools.partial(quantization_kernel, C=C, H=H,
                               inv_denom=1.0 / max(C - 1, 1))      # guard C == 1

    ev_spec = pl.BlockSpec((1, 1, chunk), lambda c, i, cb_s: (c, 0, 0))

    def const_spec(shape):
        return pl.BlockSpec(shape, lambda c, i, cb_s: (0, 0))

    vox = pl.pallas_call(
        kernel,
        out_shape=jax.ShapeDtypeStruct((B, 1, Sp), jnp.float32),
        grid_spec=pltpu.PrefetchScalarGridSpec(
            num_scalar_prefetch=1,               # cb: per-chunk batch id -> output slab index
            grid=(n_chunks, C),                  # reduction (bin) axis innermost
            in_specs=[
                ev_spec,                         # t
                ev_spec,                         # idx_rel
                const_spec((Hd, 1)),             # w1^T
                const_spec((Hd, 1)),             # b1
                const_spec((Hd, Hd)),            # w2^T
                const_spec((Hd, 1)),             # b2
                const_spec((Hd, 1)),             # w3
                const_spec((1, 1)),              # b3
            ],
            out_specs=pl.BlockSpec((1, 1, Sp), lambda c, i, cb_s: (cb_s[c], 0, 0)),
        ),
        compiler_params=pltpu.CompilerParams(
            dimension_semantics=("arbitrary", "arbitrary"),
            vmem_limit_bytes=32 * 1024 * 1024,   # explicit budget; fits v7x's 64 MiB VMEM
        ),
    )(cb, t_arr, idx_arr, w1t, b1t, w2t, b2t, w3t, b3c)

    vox = vox[:, 0, :S]                          # (B, 2*C*H) per-batch (p, i_bin, x) slab
    vox = vox.reshape(B, 2, C, H)                # vox.view(-1, 2, C, H)
    vox = jnp.transpose(vox, (0, 2, 1, 3))       # transpose(1, 2)
    return vox.reshape(-1, C, 2 * H)             # reshape(-1, C, 160)   (2*H == 160)


def reference_forward(events, params, dim):
    """Plain numpy re-implementation of QuantizationLayer.forward for verification."""
    C, H = dim
    w1, b1, w2, b2, w3, b3 = [np.asarray(q, np.float32) for q in params]
    x, t, p, b = events[:, 0], events[:, 1], events[:, 2], events[:, 3]
    B = int(events[-1, -1]) + 1
    V = 2 * C * H * B
    vox = np.zeros(V, np.float32)
    idx_before = x + H * C * p + H * C * 2 * b - 1.0
    denom = max(C - 1, 1)
    for i_bin in range(C):
        xin = (t - i_bin / denom)[:, None].astype(np.float32)
        h = xin @ w1 + b1
        h = np.where(h > 0, h, LEAKY_SLOPE * h)
        h = h @ w2 + b2
        h = np.where(h > 0, h, LEAKY_SLOPE * h)
        v = (h @ w3 + b3)[:, 0]
        vals = t * v
        idx = (idx_before + H * i_bin).astype(np.int64)
        np.add.at(vox, idx, vals)
    vox = vox / 100.0
    return vox.reshape(B, 2, C, H).transpose(0, 2, 1, 3).reshape(-1, C, 2 * H)


if __name__ == "__main__":
    # dim = (C, H): H must be 80 because the torch forward hard-codes reshape(-1, C, 160).
    C, H = 4, 80
    B, N = 2, 256
    HID = 100

    key = jax.random.PRNGKey(0)
    ks = jax.random.split(key, 9)

    # events: columns [x, t, p, b]; x in [1, H], p in {0,1}, b is the (sorted) batch index.
    xs = jax.random.randint(ks[0], (N,), 1, H + 1).astype(jnp.float32)
    ts = jax.random.uniform(ks[1], (N,), minval=0.0, maxval=1.0)
    ps = jax.random.randint(ks[2], (N,), 0, 2).astype(jnp.float32)
    bs = jnp.concatenate([jnp.zeros(N // 2), jnp.ones(N - N // 2)]).astype(jnp.float32)
    events = jnp.stack([xs, ts, ps, bs], axis=1)

    # Deterministic ValueLayer MLP params (mlp_layers = [1, 100, 100, 1]).
    w1 = 0.5 * np.asarray(jax.random.normal(ks[3], (1, HID)), np.float32)
    b1 = 0.1 * np.asarray(jax.random.normal(ks[4], (HID,)), np.float32)
    w2 = (1.0 / np.sqrt(HID)) * np.asarray(jax.random.normal(ks[5], (HID, HID)), np.float32)
    b2 = 0.1 * np.asarray(jax.random.normal(ks[6], (HID,)), np.float32)
    w3 = (1.0 / np.sqrt(HID)) * np.asarray(jax.random.normal(ks[7], (HID, 1)), np.float32)
    b3 = 0.1 * np.asarray(jax.random.normal(ks[8], (1,)), np.float32)
    params = (w1, b1, w2, b2, w3, b3)

    out = quantization_layer_forward(events, params, (C, H), chunk=128)
    out = jax.block_until_ready(out)

    ref = reference_forward(np.asarray(events, np.float32), params, (C, H))
    np.testing.assert_allclose(np.asarray(out), ref, rtol=1e-2, atol=1e-5)
    assert out.shape == (B, C, 2 * H)
    print("KERNEL_OK")
</pallas_src>

<mosaic_0001>
module attributes {stable_mosaic.version = 11 : i64} {
  func.func @quantization_kernel(%arg0: i32, %arg1: i32, %arg2: memref<2xi32, #tpu.memory_space<smem>>, %arg3: memref<1x1x128xf32, #tpu.memory_space<vmem>>, %arg4: memref<1x1x128xi32, #tpu.memory_space<vmem>>, %arg5: memref<128x1xf32, #tpu.memory_space<vmem>>, %arg6: memref<128x1xf32, #tpu.memory_space<vmem>>, %arg7: memref<128x128xf32, #tpu.memory_space<vmem>>, %arg8: memref<128x1xf32, #tpu.memory_space<vmem>>, %arg9: memref<128x1xf32, #tpu.memory_space<vmem>>, %arg10: memref<1x1xf32, #tpu.memory_space<vmem>>, %arg11: memref<1x1x640xf32, #tpu.memory_space<vmem>>) attributes {dimension_semantics = [#tpu.dimension_semantics<arbitrary>, #tpu.dimension_semantics<arbitrary>], iteration_bounds = array<i64: 2, 4>, scalar_prefetch = 1 : i64, scratch_operands = 0 : i64, tpu.core_type = #tpu.core_type<tc>, window_params = [{transform_indices = @transform_0, window_bounds = array<i64: 1, 1, 128>}, {transform_indices = @transform_1, window_bounds = array<i64: 1, 1, 128>}, {pipeline_mode = #tpu.pipeline_mode<synchronous>, transform_indices = @transform_2, window_bounds = array<i64: 128, 1>}, {pipeline_mode = #tpu.pipeline_mode<synchronous>, transform_indices = @transform_3, window_bounds = array<i64: 128, 1>}, {pipeline_mode = #tpu.pipeline_mode<synchronous>, transform_indices = @transform_4, window_bounds = array<i64: 128, 128>}, {pipeline_mode = #tpu.pipeline_mode<synchronous>, transform_indices = @transform_5, window_bounds = array<i64: 128, 1>}, {pipeline_mode = #tpu.pipeline_mode<synchronous>, transform_indices = @transform_6, window_bounds = array<i64: 128, 1>}, {pipeline_mode = #tpu.pipeline_mode<synchronous>, transform_indices = @transform_7, window_bounds = array<i64: 1, 1>}, {transform_indices = @transform_8, window_bounds = array<i64: 1, 1, 640>}]} {
    %0 = arith.index_cast %arg0 : i32 to index
    %1 = memref.load %arg2[%0] : memref<2xi32, #tpu.memory_space<smem>>
    %c1_i32 = arith.constant 1 : i32
    %2 = arith.subi %arg0, %c1_i32 : i32
    %c0_i32 = arith.constant 0 : i32
    %3 = arith.maxsi %2, %c0_i32 : i32
    %4 = arith.index_cast %3 : i32 to index
    %5 = memref.load %arg2[%4] : memref<2xi32, #tpu.memory_space<smem>>
    %c1_i32_0 = arith.constant 1 : i32
    %6 = arith.addi %arg0, %c1_i32_0 : i32
    %c1_i32_1 = arith.constant 1 : i32
    %7 = arith.minsi %6, %c1_i32_1 : i32
    %8 = arith.index_cast %7 : i32 to index
    %9 = memref.load %arg2[%8] : memref<2xi32, #tpu.memory_space<smem>>
    %c0_i32_2 = arith.constant 0 : i32
    %10 = arith.cmpi eq, %arg0, %c0_i32_2 : i32
    %11 = arith.cmpi ne, %1, %5 : i32
    %12 = arith.ori %10, %11 : i1
    %c1_i32_3 = arith.constant 1 : i32
    %13 = arith.cmpi eq, %arg0, %c1_i32_3 : i32
    %14 = arith.cmpi ne, %1, %9 : i32
    %15 = arith.ori %13, %14 : i1
    %c0_i32_4 = arith.constant 0 : i32
    %16 = arith.cmpi eq, %arg1, %c0_i32_4 : i32
    %17 = arith.andi %16, %12 : i1
    %18 = arith.extui %17 : i1 to i32
    %c0_i32_5 = arith.constant 0 : i32
    %19 = arith.cmpi ne, %18, %c0_i32_5 : i32
    scf.if %19 {
      %cst_39 = arith.constant 0.000000e+00 : f32
      %79 = vector.broadcast %cst_39 : f32 to vector<1x1x640xf32>
      %c0_40 = arith.constant 0 : index
      %c0_41 = arith.constant 0 : index
      %c0_42 = arith.constant 0 : index
      %80 = vector.load %arg11[%c0_40, %c0_41, %c0_42] : memref<1x1x640xf32, #tpu.memory_space<vmem>>, vector<1x1x640xf32>
      tpu.vector_store %arg11[%c0_40, %c0_41, %c0_42], %79 {strides = array<i32>} : memref<1x1x640xf32, #tpu.memory_space<vmem>>, vector<1x1x640xf32>,
    } else {
    }
    %c0 = arith.constant 0 : index
    %c0_6 = arith.constant 0 : index
    %c0_7 = arith.constant 0 : index
    %20 = vector.load %arg3[%c0, %c0_6, %c0_7] : memref<1x1x128xf32, #tpu.memory_space<vmem>>, vector<1x1x128xf32>
    %21 = vector.shape_cast %20 : vector<1x1x128xf32> to vector<1x128xf32>
    %22 = arith.sitofp %arg1 : i32 to f32
    %cst = arith.constant 0.333333343 : f32
    %23 = arith.mulf %22, %cst : f32
    %24 = vector.broadcast %23 : f32 to vector<1x128xf32>
    %25 = arith.subf %21, %24 : vector<1x128xf32>
    %c0_8 = arith.constant 0 : index
    %c0_9 = arith.constant 0 : index
    %26 = vector.load %arg5[%c0_8, %c0_9] : memref<128x1xf32, #tpu.memory_space<vmem>>, vector<128x1xf32>
    %27 = vector.broadcast %26 : vector<128x1xf32> to vector<128x128xf32>
    %28 = vector.broadcast %25 : vector<1x128xf32> to vector<128x128xf32>
    %29 = arith.mulf %27, %28 : vector<128x128xf32>
    %c0_10 = arith.constant 0 : index
    %c0_11 = arith.constant 0 : index
    %30 = vector.load %arg6[%c0_10, %c0_11] : memref<128x1xf32, #tpu.memory_space<vmem>>, vector<128x1xf32>
    %31 = vector.broadcast %30 : vector<128x1xf32> to vector<128x128xf32>
    %32 = arith.addf %29, %31 : vector<128x128xf32>
    %cst_12 = arith.constant 0.000000e+00 : f32
    %33 = vector.broadcast %cst_12 : f32 to vector<128x128xf32>
    %34 = arith.cmpf ogt, %32, %33 : vector<128x128xf32>
    %cst_13 = arith.constant 1.000000e-01 : f32
    %35 = vector.broadcast %cst_13 : f32 to vector<128x128xf32>
    %36 = arith.mulf %35, %32 : vector<128x128xf32>
    %37 = arith.select %34, %32, %36 : vector<128x128xi1>, vector<128x128xf32>
    %c0_14 = arith.constant 0 : index
    %c0_15 = arith.constant 0 : index
    %38 = vector.load %arg7[%c0_14, %c0_15] : memref<128x128xf32, #tpu.memory_space<vmem>>, vector<128x128xf32>
    %cst_16 = arith.constant dense<0.000000e+00> : vector<128x128xf32>
    %39 = tpu.matmul %38, %37, %cst_16 {dimension_numbers = #tpu.dot_dimension_numbers<[1], [0], [0], [1], [0, 0, 1, 1], [], []>} : vector<128x128xf32>, vector<128x128xf32>, vector<128x128xf32> -> vector<128x128xf32>
    %c0_17 = arith.constant 0 : index
    %c0_18 = arith.constant 0 : index
    %40 = vector.load %arg8[%c0_17, %c0_18] : memref<128x1xf32, #tpu.memory_space<vmem>>, vector<128x1xf32>
    %41 = vector.broadcast %40 : vector<128x1xf32> to vector<128x128xf32>
    %42 = arith.addf %39, %41 : vector<128x128xf32>
    %cst_19 = arith.constant 0.000000e+00 : f32
    %43 = vector.broadcast %cst_19 : f32 to vector<128x128xf32>
    %44 = arith.cmpf ogt, %42, %43 : vector<128x128xf32>
    %cst_20 = arith.constant 1.000000e-01 : f32
    %45 = vector.broadcast %cst_20 : f32 to vector<128x128xf32>
    %46 = arith.mulf %45, %42 : vector<128x128xf32>
    %47 = arith.select %44, %42, %46 : vector<128x128xi1>, vector<128x128xf32>
    %c0_21 = arith.constant 0 : index
    %c0_22 = arith.constant 0 : index
    %48 = vector.load %arg9[%c0_21, %c0_22] : memref<128x1xf32, #tpu.memory_space<vmem>>, vector<128x1xf32>
    %49 = vector.broadcast %48 : vector<128x1xf32> to vector<128x128xf32>
    %50 = arith.mulf %49, %47 : vector<128x128xf32>
    %cst_23 = arith.constant dense<0.000000e+00> : vector<128xf32>
    %51 = vector.multi_reduction <add>, %50, %cst_23 [0] : vector<128x128xf32> to vector<128xf32>
    %52 = vector.shape_cast %51 : vector<128xf32> to vector<1x128xf32>
    %c0_24 = arith.constant 0 : index
    %c0_25 = arith.constant 0 : index
    %53 = vector.load %arg10[%c0_24, %c0_25] : memref<1x1xf32, #tpu.memory_space<vmem>>, vector<1x1xf32>
    %54 = vector.broadcast %53 : vector<1x1xf32> to vector<1x128xf32>
    %55 = arith.addf %52, %54 : vector<1x128xf32>
    %56 = arith.mulf %21, %55 : vector<1x128xf32>
    %c0_26 = arith.constant 0 : index
    %c0_27 = arith.constant 0 : index
    %c0_28 = arith.constant 0 : index
    %57 = vector.load %arg4[%c0_26, %c0_27, %c0_28] : memref<1x1x128xi32, #tpu.memory_space<vmem>>, vector<1x1x128xi32>
    %58 = vector.shape_cast %57 : vector<1x1x128xi32> to vector<1x128xi32>
    %c80_i32 = arith.constant 80 : i32
    %59 = arith.muli %c80_i32, %arg1 : i32
    %60 = vector.broadcast %59 : i32 to vector<1x128xi32>
    %61 = arith.addi %58, %60 : vector<1x128xi32>
    %62 = tpu.iota {dimensions = array<i32: 0>} : vector<640x128xi32>
    %63 = vector.broadcast %61 : vector<1x128xi32> to vector<640x128xi32>
    %64 = arith.cmpi eq, %62, %63 : vector<640x128xi32>
    %cst_29 = arith.constant 1.000000e+00 : f32
    %cst_30 = arith.constant 0.000000e+00 : f32
    %65 = vector.broadcast %cst_29 : f32 to vector<640x128xf32>
    %66 = vector.broadcast %cst_30 : f32 to vector<640x128xf32>
    %67 = arith.select %64, %65, %66 : vector<640x128xi1>, vector<640x128xf32>
    %cst_31 = arith.constant dense<0.000000e+00> : vector<1x640xf32>
    %68 = tpu.matmul %56, %67, %cst_31 {dimension_numbers = #tpu.dot_dimension_numbers<[1], [1], [0], [0], [0, 0, 1, 0], [], []>} : vector<1x128xf32>, vector<640x128xf32>, vector<1x640xf32> -> vector<1x640xf32>
    %c0_32 = arith.constant 0 : index
    %c0_33 = arith.constant 0 : index
    %c0_34 = arith.constant 0 : index
    %69 = vector.load %arg11[%c0_32, %c0_33, %c0_34] : memref<1x1x640xf32, #tpu.memory_space<vmem>>, vector<1x1x640xf32>
    %70 = vector.shape_cast %69 : vector<1x1x640xf32> to vector<1x640xf32>
    %71 = arith.addf %70, %68 : vector<1x640xf32>
    %c0_35 = arith.constant 0 : index
    %c0_36 = arith.constant 0 : index
    %c0_37 = arith.constant 0 : index
    %72 = vector.load %arg11[%c0_35, %c0_36, %c0_37] : memref<1x1x640xf32, #tpu.memory_space<vmem>>, vector<1x1x640xf32>
    %73 = vector.shape_cast %72 : vector<1x1x640xf32> to vector<1x640xf32>
    %74 = vector.shape_cast %71 : vector<1x640xf32> to vector<1x1x640xf32>
    tpu.vector_store %arg11[%c0_35, %c0_36, %c0_37], %74 {strides = array<i32>} : memref<1x1x640xf32, #tpu.memory_space<vmem>>, vector<1x1x640xf32>,
    %c3_i32 = arith.constant 3 : i32
    %75 = arith.cmpi eq, %arg1, %c3_i32 : i32
    %76 = arith.andi %75, %15 : i1
    %77 = arith.extui %76 : i1 to i32
    %c0_i32_38 = arith.constant 0 : i32
    %78 = arith.cmpi ne, %77, %c0_i32_38 : i32
    scf.if %78 {
      %c0_39 = arith.constant 0 : index
      %c0_40 = arith.constant 0 : index
      %c0_41 = arith.constant 0 : index
      %79 = vector.load %arg11[%c0_39, %c0_40, %c0_41] : memref<1x1x640xf32, #tpu.memory_space<vmem>>, vector<1x1x640xf32>
      %cst_42 = arith.constant 1.000000e+02 : f32
      %80 = vector.broadcast %cst_42 : f32 to vector<1x1x640xf32>
      %81 = arith.divf %79, %80 : vector<1x1x640xf32>
      %c0_43 = arith.constant 0 : index
      %c0_44 = arith.constant 0 : index
      %c0_45 = arith.constant 0 : index
      %82 = vector.load %arg11[%c0_43, %c0_44, %c0_45] : memref<1x1x640xf32, #tpu.memory_space<vmem>>, vector<1x1x640xf32>
      tpu.vector_store %arg11[%c0_43, %c0_44, %c0_45], %81 {strides = array<i32>} : memref<1x1x640xf32, #tpu.memory_space<vmem>>, vector<1x1x640xf32>,
    } else {
    }
    return
  }
  func.func @transform_0(%arg0: i32, %arg1: i32, %arg2: memref<2xi32, #tpu.memory_space<smem>>) -> (i32, i32, i32) {
    %c0_i32 = arith.constant 0 : i32
    %c0_i32_0 = arith.constant 0 : i32
    %c0_i32_1 = arith.constant 0 : i32
    return %arg0, %c0_i32, %c0_i32_0 : i32, i32, i32
  }
  func.func @transform_1(%arg0: i32, %arg1: i32, %arg2: memref<2xi32, #tpu.memory_space<smem>>) -> (i32, i32, i32) {
    %c0_i32 = arith.constant 0 : i32
    %c0_i32_0 = arith.constant 0 : i32
    %c0_i32_1 = arith.constant 0 : i32
    return %arg0, %c0_i32, %c0_i32_0 : i32, i32, i32
  }
  func.func @transform_2(%arg0: i32, %arg1: i32, %arg2: memref<2xi32, #tpu.memory_space<smem>>) -> (i32, i32) {
    %c0_i32 = arith.constant 0 : i32
    %c0_i32_0 = arith.constant 0 : i32
    %c0_i32_1 = arith.constant 0 : i32
    return %c0_i32, %c0_i32_0 : i32, i32
  }
  func.func @transform_3(%arg0: i32, %arg1: i32, %arg2: memref<2xi32, #tpu.memory_space<smem>>) -> (i32, i32) {
    %c0_i32 = arith.constant 0 : i32
    %c0_i32_0 = arith.constant 0 : i32
    %c0_i32_1 = arith.constant 0 : i32
    return %c0_i32, %c0_i32_0 : i32, i32
  }
  func.func @transform_4(%arg0: i32, %arg1: i32, %arg2: memref<2xi32, #tpu.memory_space<smem>>) -> (i32, i32) {
    %c0_i32 = arith.constant 0 : i32
    %c0_i32_0 = arith.constant 0 : i32
    %c0_i32_1 = arith.constant 0 : i32
    return %c0_i32, %c0_i32_0 : i32, i32
  }
  func.func @transform_5(%arg0: i32, %arg1: i32, %arg2: memref<2xi32, #tpu.memory_space<smem>>) -> (i32, i32) {
    %c0_i32 = arith.constant 0 : i32
    %c0_i32_0 = arith.constant 0 : i32
    %c0_i32_1 = arith.constant 0 : i32
    return %c0_i32, %c0_i32_0 : i32, i32
  }
  func.func @transform_6(%arg0: i32, %arg1: i32, %arg2: memref<2xi32, #tpu.memory_space<smem>>) -> (i32, i32) {
    %c0_i32 = arith.constant 0 : i32
    %c0_i32_0 = arith.constant 0 : i32
    %c0_i32_1 = arith.constant 0 : i32
    return %c0_i32, %c0_i32_0 : i32, i32
  }
  func.func @transform_7(%arg0: i32, %arg1: i32, %arg2: memref<2xi32, #tpu.memory_space<smem>>) -> (i32, i32) {
    %c0_i32 = arith.constant 0 : i32
    %c0_i32_0 = arith.constant 0 : i32
    %c0_i32_1 = arith.constant 0 : i32
    return %c0_i32, %c0_i32_0 : i32, i32
  }
  func.func @transform_8(%arg0: i32, %arg1: i32, %arg2: memref<2xi32, #tpu.memory_space<smem>>) -> (i32, i32, i32) {
    %0 = arith.index_cast %arg0 : i32 to index
    %1 = memref.load %arg2[%0] : memref<2xi32, #tpu.memory_space<smem>>
    %c0_i32 = arith.constant 0 : i32
    %c0_i32_0 = arith.constant 0 : i32
    %c0_i32_1 = arith.constant 0 : i32
    return %1, %c0_i32, %c0_i32_0 : i32, i32, i32
  }
}

</mosaic_0001>

<bundles_post_ra>
// kernel: tpu_custom_call.1
= control target key start
LH: loop header
LB: loop body
LE: loop exit
PB: predicated region body
PF: predicated region fallthrough
CT: control target
= control target key end

     0   :  { %s3067_s0 = inlined_call_operand.vmem [shape: s32[2], index: 0, kind: input, shape index: {}]   ;;  %s3068_s1 = inlined_call_operand.vmem [shape: f32[2,1,128], index: 1, kind: input, shape index: {}]   ;;  %s3069_s2 = inlined_call_operand.vmem [shape: s32[2,1,128], index: 2, kind: input, shape index: {}]   ;;  %s3070_s3 = inlined_call_operand.vmem [shape: f32[128,1], index: 3, kind: input, shape index: {}]   ;;  %s3071_s4 = inlined_call_operand.vmem [shape: f32[128,1], index: 4, kind: input, shape index: {}]   ;;  %s3072_s5 = inlined_call_operand.vmem [shape: f32[128,128], index: 5, kind: input, shape index: {}]   ;;  %s3073_s6 = inlined_call_operand.vmem [shape: f32[128,1], index: 6, kind: input, shape index: {}]   ;;  %s3074_s7 = inlined_call_operand.vmem [shape: f32[128,1], index: 7, kind: input, shape index: {}]   ;;  %s3075_s9 = inlined_call_operand.hbm [shape: f32[2,1,640], index: 9, kind: output, shape index: {}]   ;;  %s3076_s8 = inlined_call_operand.<no memory space> [shape: f32[1,1], index: 8, kind: input, shape index: {}]  }
   0x1   :  { %3080 = sst [smem:[#allocation13_spill]] %s3068_s1  ;;  %s14_s11 = sshll.u32 %s3067_s0, 4  ;;  %v18_v0 = vstv %s3076_s8  ;;  %s15_s11 = int_to_ptr.vmem [resolvable:$true] %s14_s11 }
   0x2   :  { %3081 = sst [smem:[#allocation14_spill]] %s3070_s3  ;;  %19 = vst [vmem:[#allocation4] sm:$0x1] %v18_v0  ;;  %s2211_s14 = scalar_lea.vmem %s15_s11, 16 }
   0x3   :  { %p2212_p0 = scmp.ne.s32.totalorder %s15_s11, %s2211_s14  ;;  %p2216_p1 = scmp.lt.s32.totalorder %s15_s11, %s15_s11 }
   0x4   :  { %p2217_p2 = scmp.lt.s32.totalorder %s2211_s14, %s2211_s14 }
   0x6   :  { %p2218_p3 = por %p2217_p2, %p2216_p1 }
   0x8   :  { %p2219_p4 = pnand %p2218_p3, %p2212_p0 }
   0xa   :  { %2222 = shalt.err (!%p2219_p4)  }
   0xb   :  { %s2321_s15 = smov [#allocation3]  }
   0xc   :  { %17 = dma.vmem_to_smem %s15_s11, 16, %s2321_s15, [#allocation2] }
   0xd   :  { %2283 = dma.done.wait [#allocation2], 16 }
   0xe   :  { %2284 = vsyncadd [#allocation2], 4294967280 }
   0xf   :  { %21 = sfence }
  0x10   :  { %22 = vsyncpa [#allocation6], 0 }
  0x11   :  { %24 = vsyncpa [#allocation6 + $0x1], 0  ;;  %s2386_s0 = smov 0   ;;  %s2388_s16 = smov 0  }
  0x12   :  { %s2390_s8 = smov 0   ;;  %s2392_s17 = smov 0  }
  0x13   :  { %s2394_s18 = smov 0   ;;  %s2396_s19 = smov 0  }
  0x14   :  { %s2398_s20 = smov 0   ;;  %s2400_s21 = smov 0  }
  0x15 LB: > { %3082 = sst [smem:[#allocation10_spill]] %s2315_s20  ;;  %s1708_s22 = sadd.s32 4294967295, %s2319_s21   ;;  %s2319_s21 = sphi %s2400_s21, %s30_s21   ;;  %s2315_s20 = sphi %s2398_s20, %s3095_s20   ;;  %s2311_s19 = sphi %s2396_s19, %s3100_s19   ;;  %s2307_s18 = sphi %s2394_s18, %s3093_s18   ;;  %s2303_s17 = sphi %s2392_s17, %s3099_s17   ;;  %s2299_s8 = sphi %s2390_s8, %s3098_s8   ;;  %s2295_s16 = sphi %s2388_s16, %s3097_s16   ;;  %s2291_s0 = sphi %s2386_s0, %s3096_s0  }
  0x16   : > { %s1709_s23 = sadd.s32 4294967294, %s2319_s21   ;;  %s39_s24 = sadd.s32 1, %s2311_s19 }
  0x17   : > { %p40_p5 = scmp.ge.s32.totalorder %s39_s24, 4  ;;  %s42_s25 = sadd.s32 1, %s2315_s20 }
  0x18   : > { %s224_s26 = sld [smem:[#allocation3 + %s2315_s20]]  ;;  %p239_p6 = scmp.ne.s32.totalorder %s2299_s8, %s2295_s16 }
  0x19   : > { %s3102_s24 = smov (%p40_p5, %s39_s24), 0  ;;  %s3104_s25 = smov (!%p40_p5, %s42_s25), %s2315_s20 }
  0x1a   : > { %3083 = sst [smem:[#allocation11_spill]] %s3102_s24  ;;  %p240_p7 = scmp.eq.s32.totalorder %s1708_s22, 7 }
  0x1b   : > { %p245_p8 = scmp.ne.s32.totalorder %s2295_s16, %s2291_s0  ;;  %p44_p9 = scmp.ge.s32.totalorder %s3104_s25, 2 }
  0x1c   : > { %p246_p10 = scmp.eq.s32.totalorder %s1709_s23, 7  ;;  %p2438_p11 = por %p240_p7, %p239_p6 }
  0x1d   : > { %p1712_p12 = scmp.ge.s32.totalorder %s2319_s21, 1  ;;  %s3106_s25 = smov (%p44_p9, %s3104_s25), 0 }
  0x1e   : > { %3085 = sst [smem:[#allocation12_spill]] %s3106_s25  ;;  %p2445_p13 = por %p246_p10, %p245_p8 }
  0x1f   : > { %p294_p0 = scmp.lt.s32.totalorder %s2319_s21, 9  ;;  %s225_s29 = sld [smem:[#allocation3 + %s3106_s25]] }
  0x20   : > { %s229_s10 = sadd.s32 1, %s2299_s8 }
  0x21   : > { %p295_p1 = pnand %p1712_p12, %p294_p0 }
  0x22   : > { %s3078_s12 = sand.u32 (!%p295_p1), 1, %s2295_s16   ;;  %p329_p3 = scmp.lt.s32.totalorder (!%p295_p1), %s2307_s18, 1 }
  0x23   : > { %298 = sbr.rel (%p295_p1) target bundleno = 859 (0x35b), region = 52  ;;  %s1713_s15 = sadd.s32 (!%p295_p1), 4294967295, %s2307_s18 }
  0x24   : > { %s2125_s13 = smul.u32 (!%p295_p1), 5, %s3078_s12  ;;  %s3087_s1 = sld [smem:[#allocation13_spill]] (!%p295_p1) }
  0x25   : > { %s226_s30 = ssub.s32 %s224_s26, %s225_s29  ;;  %p338_p4 = scmp.gt.s32.totalorder (!%p295_p1), %s1713_s15, 0 }
  0x26   : > { %p227_p2 = scmp.eq.s32.totalorder %s226_s30, 0  ;;  %s341_s25 = sadd.s32 (!%p295_p1), 1, %s2307_s18 }
  0x27   : > { %s336_s24 = sld [smem:[#allocation3 + %s2307_s18]] (!%p295_p1)  ;;  %p342_p5 = scmp.lt.s32.totalorder (!%p295_p1), %s341_s25, 1 }
  0x28   : > { %s2453_s11 = scalar_select %p227_p2, %s2299_s8, %s229_s10  }
  0x29   : > { %p345_p6 = scmp.eq.s32.totalorder (!%p295_p1), %s2307_s18, 0  ;;  %p348_p7 = scmp.eq.s32.totalorder (!%p295_p1), %s2307_s18, 1 }
  0x2a   : > { %s2460_s14 = scalar_select %p329_p3, %s2307_s18, 1 }
  0x2b   : > { %s3108_s15 = smov (!%p338_p4, %s1713_s15), 0  ;;  %s3110_s25 = smov (!%p342_p5, %s341_s25), 1 }
  0x2c   : > { %s2467_s26 = scalar_lea.vmem %s3087_s1, %s2460_s14  ;;  %s340_s12 = sld [smem:[#allocation3 + %s3108_s15]] }
  0x2d   : > { %s344_s20 = sld [smem:[#allocation3 + %s3110_s25]]  ;;  %p351_p9 = scmp.eq.s32.totalorder %s2303_s17, 0 }
  0x2e   : > { %s2482_s23 = scalar_lea.vmem [#allocation5], %s2125_s13 }
  0x32   : > { %p346_p8 = scmp.ne.s32.totalorder %s336_s24, %s340_s12 }
  0x33   : > { %p349_p10 = scmp.ne.s32.totalorder %s336_s24, %s344_s20 }
  0x34   : > { %p347_p12 = por %p346_p8, %p345_p6 }
  0x35   : > { %p2478_p0 = por %p349_p10, %p348_p7 }
  0x36   : > { %p352_p1 = pnand %p351_p9, %p347_p12 }
  0x37   : > { %v356_v1 = vlaneseq (!%p352_p1)  ;;  %v2322_v2 = vmov (!%p352_p1), 0.0  }
  0x38   : > { %355 = sbr.rel (%p352_p1) target bundleno = 63 (0x3f), region = 56 }
  0x39   : > { %vm358_vm0 = vcmp.lt.s32.totalorder (!%p352_p1), %v356_v1, 640 }
  0x3a   : > { %360 = vst.msk [vmem:[%s2482_s23] sm:$0x1f] (!%p352_p1), %vm358_vm0, %v2322_v2 }
  0x3f PF: > { %v484_v3 = vld [vmem:[%s3071_s4] sm:$0xff]  ;;  %s3089_s3 = sld [smem:[#allocation14_spill]]  ;;  %v2323_v5 = vmov 0   ;;  %v485_v6 = vld [vmem:[%s3071_s4 + $0x8] sm:$0xff]  ;;  %v487_v10 = vld [vmem:[%s3071_s4 + $0x18] sm:$0xff]  ;;  %s362_s25 = scvt.s32.f32 %s2303_s17  ;;  %v463_v63 = vlaneseq }
  0x40   : > { %2209 = vset.pattern.permute.xlu1 %v2323_v5  ;;  %2208 = vset.pattern.permute.xlu0 %v2323_v5  ;;  %v486_v11 = vld [vmem:[%s3071_s4 + $0x10] sm:$0xff]  ;;  %v489_v14 = vld [vmem:[%s3071_s4 + $0x28] sm:$0xff]  ;;  %v488_v15 = vld [vmem:[%s3071_s4 + $0x20] sm:$0xff]  ;;  %s1095_s12 = smul.u32 80, %s2303_s17  ;;  %p1607_p2 = scmp.eq.s32.totalorder %s2303_s17, 3 }
  0x41   : > { %502 = vperm.xlu1 %2209, %v484_v3   ;;  %v491_v18 = vld [vmem:[%s3071_s4 + $0x38] sm:$0xff]  ;;  %v490_v19 = vld [vmem:[%s3071_s4 + $0x30] sm:$0xff]  ;;  %v493_v22 = vld [vmem:[%s3071_s4 + $0x48] sm:$0xff]  ;;  %s363_s10 = smul.f32 0.33333334, %s362_s25  ;;  %v2671_v2 = vshrl.u32 %v463_v63, 7  ;;  %s3090_s25 = scalar_lea.vmem %s3069_s2, %s2460_s14 }
  0x42   : > { %v492_v23 = vld [vmem:[%s3071_s4 + $0x40] sm:$0xff]  ;;  %v495_v26 = vld [vmem:[%s3071_s4 + $0x58] sm:$0xff]  ;;  %v494_v27 = vld [vmem:[%s3071_s4 + $0x50] sm:$0xff]  ;;  %p2998_p3 = pnand %p1607_p2, %p2478_p0 }
  0x43   : > { %v497_v30 = vld [vmem:[%s3071_s4 + $0x68] sm:$0xff]  ;;  %v496_v31 = vld [vmem:[%s3071_s4 + $0x60] sm:$0xff]  ;;  %v499_v34 = vld [vmem:[%s3071_s4 + $0x78] sm:$0xff] }
  0x44   : > { %v498_v35 = vld [vmem:[%s3071_s4 + $0x70] sm:$0xff]  ;;  %v661_v36 = vld [vmem:[%s3073_s6 + $0x8] sm:$0xff]  ;;  %v660_v37 = vld [vmem:[%s3073_s6] sm:$0xff] }
  0x45   : > { %v366_v4 = vld [vmem:[%s3089_s3] sm:$0xff]  ;;  %v367_v7 = vld [vmem:[%s3089_s3 + $0x8] sm:$0xff]  ;;  %507 = vperm.xlu1 %2209, %v485_v6   ;;  %v369_v8 = vld [vmem:[%s3089_s3 + $0x18] sm:$0xff]  ;;  %v364_v6 = vstv %s363_s10 }
  0x46   : > { %384 = vperm.xlu0 %2208, %v366_v4   ;;  %v368_v9 = vld [vmem:[%s3089_s3 + $0x10] sm:$0xff]  ;;  %v371_v12 = vld [vmem:[%s3089_s3 + $0x28] sm:$0xff]  ;;  %v370_v13 = vld [vmem:[%s3089_s3 + $0x20] sm:$0xff] }
  0x47   : > { %v373_v16 = vld [vmem:[%s3089_s3 + $0x38] sm:$0xff]  ;;  %v372_v17 = vld [vmem:[%s3089_s3 + $0x30] sm:$0xff]  ;;  %v375_v20 = vld [vmem:[%s3089_s3 + $0x48] sm:$0xff] }
  0x48   : > { %v374_v21 = vld [vmem:[%s3089_s3 + $0x40] sm:$0xff]  ;;  %v377_v24 = vld [vmem:[%s3089_s3 + $0x58] sm:$0xff]  ;;  %v376_v25 = vld [vmem:[%s3089_s3 + $0x50] sm:$0xff] }
  0x49   : > { %399 = vperm.xlu1 %2209, %v369_v8   ;;  %v379_v28 = vld [vmem:[%s3089_s3 + $0x68] sm:$0xff]  ;;  %v378_v29 = vld [vmem:[%s3089_s3 + $0x60] sm:$0xff]  ;;  %v381_v32 = vld [vmem:[%s3089_s3 + $0x78] sm:$0xff]  ;;  %v1096_v8 = vstv %s1095_s12 }
  0x4a   : > { %389 = vperm.xlu0 %2208, %v367_v7   ;;  %v380_v33 = vld [vmem:[%s3089_s3 + $0x70] sm:$0xff]  ;;  %v663_v38 = vld [vmem:[%s3073_s6 + $0x18] sm:$0xff]  ;;  %v644_v40 = vld [vmem:[%s3072_s5] sm:$0xff] }
  0x4b   : > { %v662_v39 = vld [vmem:[%s3073_s6 + $0x10] sm:$0xff]  ;;  %v950_v41 = vld [vmem:[%s3074_s7 + $0x8] sm:$0xff]  ;;  %v949_v42 = vld [vmem:[%s3074_s7] sm:$0xff]  ;;  %1946 = vmatprep.mubr.f32.mxu0 %v644_v40 }
  0x4c   : > { %v951_v43 = vld [vmem:[%s3074_s7 + $0x10] sm:$0xff]  ;;  %v664_v44 = vld [vmem:[%s3073_s6 + $0x20] sm:$0xff]  ;;  %v952_v45 = vld [vmem:[%s3074_s7 + $0x18] sm:$0xff] }
  0x4d   : > { %517 = vperm.xlu1 %2209, %v487_v10   ;;  %v665_v46 = vld [vmem:[%s3073_s6 + $0x28] sm:$0xff]  ;;  %v953_v47 = vld [vmem:[%s3074_s7 + $0x20] sm:$0xff]  ;;  %v666_v48 = vld [vmem:[%s3073_s6 + $0x30] sm:$0xff] }
  0x4e   : > { %394 = vperm.xlu0 %2208, %v368_v9   ;;  %v954_v49 = vld [vmem:[%s3074_s7 + $0x28] sm:$0xff]  ;;  %v667_v50 = vld [vmem:[%s3073_s6 + $0x38] sm:$0xff]  ;;  %v955_v51 = vld [vmem:[%s3074_s7 + $0x30] sm:$0xff]  ;;  %v2686_v9 = vsub.s32 0, %v2671_v2 }
  0x4f   : > { %v668_v52 = vld [vmem:[%s3073_s6 + $0x40] sm:$0xff]  ;;  %v956_v53 = vld [vmem:[%s3074_s7 + $0x38] sm:$0xff]  ;;  %v669_v54 = vld [vmem:[%s3073_s6 + $0x48] sm:$0xff] }
  0x50   : > { %v957_v55 = vld [vmem:[%s3074_s7 + $0x40] sm:$0xff]  ;;  %v670_v56 = vld [vmem:[%s3073_s6 + $0x50] sm:$0xff]  ;;  %v958_v57 = vld [vmem:[%s3074_s7 + $0x48] sm:$0xff] }
  0x51   : > { %409 = vperm.xlu1 %2209, %v371_v12   ;;  %v671_v58 = vld [vmem:[%s3073_s6 + $0x58] sm:$0xff]  ;;  %v959_v59 = vld [vmem:[%s3074_s7 + $0x50] sm:$0xff]  ;;  %v672_v60 = vld [vmem:[%s3073_s6 + $0x60] sm:$0xff] }
  0x52   : > { %512 = vperm.xlu0 %2208, %v486_v11   ;;  %v960_v61 = vld [vmem:[%s3074_s7 + $0x58] sm:$0xff]  ;;  %v673_v62 = vld [vmem:[%s3073_s6 + $0x68] sm:$0xff]  ;;  %v961_v0 = vld [vmem:[%s3074_s7 + $0x60] sm:$0xff] }
  0x53   : > { %v674_v1 = vld [vmem:[%s3073_s6 + $0x70] sm:$0xff]  ;;  %v962_v3 = vld [vmem:[%s3074_s7 + $0x68] sm:$0xff]  ;;  %v675_v4 = vld [vmem:[%s3073_s6 + $0x78] sm:$0xff] }
  0x54   : > { %v361_v5 = vld [vmem:[%s2467_s26] sm:$0x1]  ;;  %v964_v11 = vld [vmem:[%s3074_s7 + $0x78] sm:$0xff]  ;;  %v963_v12 = vld [vmem:[%s3074_s7 + $0x70] sm:$0xff] }
  0x55   : > { %527 = vperm.xlu1 %2209, %v489_v14   ;;  %v1094_v7 = vld [vmem:[%s3090_s25] sm:$0x1]  ;;  %v365_v10 = vsub.f32 %v361_v5, %v364_v6 }
  0x56   : > { %404 = vperm.xlu0 %2208, %v370_v13   ;;  %v1097_v13 = vadd.s32 %v1096_v8, %v1094_v7 }
  0x57   : > { %v2695_v14 = vrot.slane %v365_v10, %v2686_v9 }
  0x59   : > { %419 = vperm.xlu1 %2209, %v373_v16   ;;  %v2698_v16 = vrot.slane %v1097_v13, %v2686_v9 }
  0x5a   : > { %522 = vperm.xlu0 %2208, %v488_v15   ;;  %v1082_v15 = vld [vmem:[#allocation4] sm:$0x1] }
  0x5b   : > { %vm1183_vm1 = vcmp.eq.s32.totalorder %v2671_v2, %v2698_v16 }
  0x5d   : > { %537 = vperm.xlu1 %2209, %v491_v18  }
  0x5e   : > { %414 = vperm.xlu0 %2208, %v372_v17  }
  0x61   : > { %429 = vperm.xlu1 %2209, %v375_v20   ;;  %v1115_v20 = vadd.s32 128, %v2671_v2 }
  0x62   : > { %532 = vperm.xlu0 %2208, %v490_v19  }
  0x63   : > { %vm1199_vm2 = vcmp.eq.s32.totalorder %v1115_v20, %v2698_v16 }
  0x65   : > { %547 = vperm.xlu1 %2209, %v493_v22   ;;  %v1100_v22 = vadd.s32 8, %v2671_v2 }
  0x66   : > { %424 = vperm.xlu0 %2208, %v374_v21   ;;  %v1116_v21 = vadd.s32 136, %v2671_v2 }
  0x67   : > { %vm1184_vm5 = vcmp.eq.s32.totalorder %v1100_v22, %v2698_v16 }
  0x68   : > { %vm1200_vm3 = vcmp.eq.s32.totalorder %v1116_v21, %v2698_v16  ;;  %vm2039_vm6 = vmpackc.low %vm1184_vm5, %vm1183_vm1 }
  0x69   : > { %439 = vperm.xlu1 %2209, %v377_v24   ;;  %vm2037_vm4 = vmpackc.low %vm1200_vm3, %vm1199_vm2 }
  0x6a   : > { %542 = vperm.xlu0 %2208, %v492_v23  }
  0x6d   : > { %557 = vperm.xlu1 %2209, %v495_v26  }
  0x6e   : > { %434 = vperm.xlu0 %2208, %v376_v25  }
  0x71   : > { %449 = vperm.xlu1 %2209, %v379_v28  }
  0x72   : > { %552 = vperm.xlu0 %2208, %v494_v27   ;;  %v2324_v27 = vmov 1.0|1.0  }
  0x73   : > { %2038 = vmatprep.subr.msk.bf16.mxu1 %vm2037_vm4, %v2324_v27 }
  0x74   : > { %2040 = vmatpush3.bf16.xpose.msk.msra.mxu1 %vm2039_vm6, %v2324_v27 }
  0x75   : > { %567 = vperm.xlu1 %2209, %v497_v30  }
  0x76   : > { %444 = vperm.xlu0 %2208, %v378_v29  }
  0x79   : > { %459 = vperm.xlu1 %2209, %v381_v32  }
  0x7a   : > { %562 = vperm.xlu0 %2208, %v496_v31  }
  0x7d   : > { %577 = vperm.xlu1 %2209, %v499_v34  }
  0x7e   : > { %454 = vperm.xlu0 %2208, %v380_v33  }
  0x81   : > { %683 = vperm.xlu1 %2209, %v661_v36  }
  0x82   : > { %572 = vperm.xlu0 %2208, %v498_v35  }
  0x85   : > { %693 = vperm.xlu1 %2209, %v663_v38  }
  0x86   : > { %678 = vperm.xlu0 %2208, %v660_v37  }
  0x89   : > { %972 = vperm.xlu1 %2209, %v950_v41  }
  0x8a   : > { %688 = vperm.xlu0 %2208, %v662_v39  }
  0x8d   : > { %977 = vperm.xlu1 %2209, %v951_v43  }
  0x8e   : > { %967 = vperm.xlu0 %2208, %v949_v42  }
  0x91   : > { %982 = vperm.xlu1 %2209, %v952_v45  }
  0x92   : > { %698 = vperm.xlu0 %2208, %v664_v44  }
  0x95   : > { %987 = vperm.xlu1 %2209, %v953_v47  }
  0x96   : > { %703 = vperm.xlu0 %2208, %v665_v46  }
  0x99   : > { %992 = vperm.xlu1 %2209, %v954_v49  }
  0x9a   : > { %708 = vperm.xlu0 %2208, %v666_v48  }
  0x9d   : > { %997 = vperm.xlu1 %2209, %v955_v51  }
  0x9e   : > { %713 = vperm.xlu0 %2208, %v667_v50  }
  0xa1   : > { %1002 = vperm.xlu1 %2209, %v956_v53  }
  0xa2   : > { %718 = vperm.xlu0 %2208, %v668_v52  }
  0xa5   : > { %1007 = vperm.xlu1 %2209, %v957_v55  }
  0xa6   : > { %723 = vperm.xlu0 %2208, %v669_v54  }
  0xa9   : > { %1012 = vperm.xlu1 %2209, %v958_v57  }
  0xaa   : > { %728 = vperm.xlu0 %2208, %v670_v56  }
  0xad   : > { %1017 = vperm.xlu1 %2209, %v959_v59  }
  0xae   : > { %733 = vperm.xlu0 %2208, %v671_v58  }
  0xb1   : > { %1022 = vperm.xlu1 %2209, %v960_v61  }
  0xb2   : > { %738 = vperm.xlu0 %2208, %v672_v60  }
  0xb5   : > { %1027 = vperm.xlu1 %2209, %v961_v0  }
  0xb6   : > { %743 = vperm.xlu0 %2208, %v673_v62  }
  0xb9   : > { %1032 = vperm.xlu1 %2209, %v962_v3  }
  0xba   : > { %748 = vperm.xlu0 %2208, %v674_v1  }
  0xbd   : > { %1042 = vperm.xlu1 %2209, %v964_v11  }
  0xbe   : > { %753 = vperm.xlu0 %2208, %v675_v4  }
  0xc0   : > { %v503_v17 = vpop.permute.xlu1 %502 }
  0xc2   : > { %1037 = vperm.xlu0 %2208, %v963_v12  }
  0xc4   : > { %v508_v24 = vpop.permute.xlu1 %507 }
  0xc5   : > { %v385_v18 = vpop.permute.xlu0 %384 }
  0xc6   : > { %v468_v19 = vmul.f32 %v2695_v14, %v385_v18  ;;  %1085 = vperm.xlu0 %2208, %v1082_v15  }
  0xc8   : > { %v580_v23 = vadd.f32 %v503_v17, %v468_v19  ;;  %v400_v30 = vpop.permute.xlu1 %399 }
  0xc9   : > { %v390_v25 = vpop.permute.xlu0 %389  ;;  %v471_v33 = vmul.f32 %v2695_v14, %v400_v30 }
  0xca   : > { %v469_v26 = vmul.f32 %v2695_v14, %v390_v25  ;;  %v612_v29 = vmul.f32 0.1, %v580_v23  ;;  %vm596_vm7 = vcmp.gt.f32.partialorder %v580_v23, 0.0 }
  0xcc   : > { %v581_v28 = vadd.f32 %v508_v24, %v469_v26  ;;  %v628_v35 = vsel %vm596_vm7, %v580_v23, %v612_v29  ;;  %v518_v37 = vpop.permute.xlu1 %517 }
  0xcd   : > { %v395_v31 = vpop.permute.xlu0 %394  ;;  %v583_v40 = vadd.f32 %v518_v37, %v471_v33 }
  0xce   : > { %vm597_vm8 = vcmp.gt.f32.partialorder %v581_v28, 0.0  ;;  %v613_v32 = vmul.f32 0.1, %v581_v28  ;;  %v470_v34 = vmul.f32 %v2695_v14, %v395_v31 }
  0xcf   : > { %vm599_vm9 = vcmp.gt.f32.partialorder %v583_v40, 0.0  ;;  %v615_v42 = vmul.f32 0.1, %v583_v40 }
  0xd0   : > { %v629_v36 = vsel %vm597_vm8, %v581_v28, %v613_v32  ;;  %v410_v44 = vpop.permute.xlu1 %409 }
  0xd1   : > { %v513_v38 = vpop.permute.xlu0 %512  ;;  %v2005_v39 = vpack.c.bf16 %v629_v36, %v628_v35  ;;  %v631_v47 = vsel %vm599_vm9, %v583_v40, %v615_v42  ;;  %v473_v49 = vmul.f32 %v2695_v14, %v410_v44 }
  0xd2   : > { %v582_v41 = vadd.f32 %v513_v38, %v470_v34 }
  0xd3   : > { %2006 = vmatprep.subr.bf16.mxu0 %v2005_v39 }
  0xd4   : > { %vm598_vm10 = vcmp.gt.f32.partialorder %v582_v41, 0.0  ;;  %v614_v43 = vmul.f32 0.1, %v582_v41  ;;  %2008 = vmatpush3.bf16.msra.mxu0 %v2005_v39  ;;  %v528_v51 = vpop.permute.xlu1 %527 }
  0xd5   : > { %v405_v45 = vpop.permute.xlu0 %404  ;;  %v585_v53 = vadd.f32 %v528_v51, %v473_v49 }
  0xd6   : > { %v630_v46 = vsel %vm598_vm10, %v582_v41, %v614_v43  ;;  %v472_v50 = vmul.f32 %v2695_v14, %v405_v45 }
  0xd7   : > { %v2009_v48 = vpack.c.bf16 %v631_v47, %v630_v46  ;;  %vm601_vm11 = vcmp.gt.f32.partialorder %v585_v53, 0.0  ;;  %v617_v55 = vmul.f32 0.1, %v585_v53 }
  0xd8   : > { %v420_v57 = vpop.permute.xlu1 %419 }
  0xd9   : > { %v523_v52 = vpop.permute.xlu0 %522  ;;  %2010 = vmatprep.subr.bf16.mxu0 %v2009_v48  ;;  %v633_v60 = vsel %vm601_vm11, %v585_v53, %v617_v55  ;;  %v475_v62 = vmul.f32 %v2695_v14, %v420_v57 }
  0xda   : > { %v584_v54 = vadd.f32 %v523_v52, %v472_v50  ;;  %2012 = vmatpush3.bf16.msra.mxu0 %v2009_v48 }
  0xdc   : > { %vm600_vm12 = vcmp.gt.f32.partialorder %v584_v54, 0.0  ;;  %v616_v56 = vmul.f32 0.1, %v584_v54  ;;  %v538_v1 = vpop.permute.xlu1 %537 }
  0xdd   : > { %v415_v58 = vpop.permute.xlu0 %414  ;;  %v587_v4 = vadd.f32 %v538_v1, %v475_v62 }
  0xde   : > { %v632_v59 = vsel %vm600_vm12, %v584_v54, %v616_v56  ;;  %v474_v0 = vmul.f32 %v2695_v14, %v415_v58 }
  0xdf   : > { %v2013_v61 = vpack.c.bf16 %v633_v60, %v632_v59  ;;  %vm603_vm13 = vcmp.gt.f32.partialorder %v587_v4, 0.0  ;;  %v619_v6 = vmul.f32 0.1, %v587_v4  ;;  %v1147_v60 = vadd.s32 384, %v2671_v2 }
  0xe0   : > { %v430_v8 = vpop.permute.xlu1 %429 }
  0xe1   : > { %v533_v3 = vpop.permute.xlu0 %532  ;;  %2014 = vmatprep.subr.bf16.mxu0 %v2013_v61  ;;  %v635_v12 = vsel %vm603_vm13, %v587_v4, %v619_v6  ;;  %v477_v15 = vmul.f32 %v2695_v14, %v430_v8  ;;  %vm1231_vm7 = vcmp.eq.s32.totalorder %v1147_v60, %v2698_v16  ;;  %v1131_v6 = vadd.s32 256, %v2671_v2  ;;  %v645_v8 = vld [vmem:[%s3072_s5 + $0x8] sm:$0xff] }
  0xe2   : > { %v586_v5 = vadd.f32 %v533_v3, %v474_v0  ;;  %2016 = vmatpush3.bf16.msra.mxu0 %v2013_v61  ;;  %v1148_v61 = vadd.s32 392, %v2671_v2  ;;  %v1126_v60 = vadd.s32 216, %v2671_v2 }
  0xe3   : > { %vm1215_vm10 = vcmp.eq.s32.totalorder %v1131_v6, %v2698_v16  ;;  %v1111_v6 = vadd.s32 96, %v2671_v2 }
  0xe4   : > { %vm602_vm14 = vcmp.gt.f32.partialorder %v586_v5, 0.0  ;;  %v618_v7 = vmul.f32 0.1, %v586_v5  ;;  %v548_v18 = vpop.permute.xlu1 %547  ;;  %vm1232_vm8 = vcmp.eq.s32.totalorder %v1148_v61, %v2698_v16  ;;  %v1109_v61 = vadd.s32 80, %v2671_v2 }
  0xe5   : > { %v425_v10 = vpop.permute.xlu0 %424  ;;  %v589_v20 = vadd.f32 %v548_v18, %v477_v15  ;;  %vm2069_vm9 = vmpackc.low %vm1232_vm8, %vm1231_vm7  ;;  %v650_v15 = vld [vmem:[%s3072_s5 + $0x30] sm:$0xff]  ;;  %v652_v18 = vld [vmem:[%s3072_s5 + $0x40] sm:$0xff] }
  0xe6   : > { %v634_v11 = vsel %vm602_vm14, %v586_v5, %v618_v7  ;;  %v476_v17 = vmul.f32 %v2695_v14, %v425_v10  ;;  %v1132_v7 = vadd.s32 264, %v2671_v2  ;;  %v646_v10 = vld [vmem:[%s3072_s5 + $0x10] sm:$0xff] }
  0xe7   : > { %v2017_v13 = vpack.c.bf16 %v635_v12, %v634_v11  ;;  %vm605_vm15 = vcmp.gt.f32.partialorder %v589_v20, 0.0  ;;  %v621_v22 = vmul.f32 0.1, %v589_v20  ;;  %v647_v11 = vld [vmem:[%s3072_s5 + $0x18] sm:$0xff]  ;;  %v648_v12 = vld [vmem:[%s3072_s5 + $0x20] sm:$0xff] }
  0xe8   : > { %v440_v24 = vpop.permute.xlu1 %439  ;;  %vm1216_vm11 = vcmp.eq.s32.totalorder %v1132_v7, %v2698_v16  ;;  %v1112_v7 = vadd.s32 104, %v2671_v2 }
  0xe9   : > { %v543_v19 = vpop.permute.xlu0 %542  ;;  %2018 = vmatprep.subr.bf16.mxu0 %v2017_v13  ;;  %v637_v28 = vsel %vm605_vm15, %v589_v20, %v621_v22  ;;  %v479_v30 = vmul.f32 %v2695_v14, %v440_v24  ;;  %vm2071_vm12 = vmpackc.low %vm1216_vm11, %vm1215_vm10  ;;  %v654_v20 = vld [vmem:[%s3072_s5 + $0x50] sm:$0xff]  ;;  %v656_v22 = vld [vmem:[%s3072_s5 + $0x60] sm:$0xff] }
  0xea   : > { %v588_v21 = vadd.f32 %v543_v19, %v476_v17  ;;  %2020 = vmatpush3.bf16.msra.mxu0 %v2017_v13  ;;  %v649_v13 = vld [vmem:[%s3072_s5 + $0x28] sm:$0xff]  ;;  %v651_v17 = vld [vmem:[%s3072_s5 + $0x38] sm:$0xff]  ;;  %v658_v24 = vld [vmem:[%s3072_s5 + $0x70] sm:$0xff] }
  0xeb   : > { %v653_v19 = vld [vmem:[%s3072_s5 + $0x48] sm:$0xff] }
  0xec   : > { %vm604_vm0 = vcmp.gt.f32.partialorder %v588_v21, 0.0  ;;  %v620_v23 = vmul.f32 0.1, %v588_v21  ;;  %v558_v32 = vpop.permute.xlu1 %557 }
  0xed   : > { %v435_v25 = vpop.permute.xlu0 %434  ;;  %v591_v34 = vadd.f32 %v558_v32, %v479_v30  ;;  %v1102_v30 = vadd.s32 24, %v2671_v2  ;;  %v1150_v32 = vadd.s32 408, %v2671_v2 }
  0xee   : > { %v636_v26 = vsel %vm604_vm0, %v588_v21, %v620_v23  ;;  %v478_v31 = vmul.f32 %v2695_v14, %v435_v25  ;;  %v655_v21 = vld [vmem:[%s3072_s5 + $0x58] sm:$0xff]  ;;  %v657_v23 = vld [vmem:[%s3072_s5 + $0x68] sm:$0xff] }
  0xef   : > { %v2021_v29 = vpack.c.bf16 %v637_v28, %v636_v26  ;;  %vm607_vm1 = vcmp.gt.f32.partialorder %v591_v34, 0.0  ;;  %v623_v36 = vmul.f32 0.1, %v591_v34  ;;  %v659_v25 = vld [vmem:[%s3072_s5 + $0x78] sm:$0xff]  ;;  %v1117_v26 = vadd.s32 144, %v2671_v2 }
  0xf0   : > { %v450_v38 = vpop.permute.xlu1 %449  ;;  %v1118_v28 = vadd.s32 152, %v2671_v2 }
  0xf1   : > { %v553_v33 = vpop.permute.xlu0 %552  ;;  %2022 = vmatprep.subr.bf16.mxu0 %v2021_v29  ;;  %v639_v41 = vsel %vm607_vm1, %v591_v34, %v623_v36  ;;  %v481_v43 = vmul.f32 %v2695_v14, %v450_v38  ;;  %vm1201_vm13 = vcmp.eq.s32.totalorder %v1117_v26, %v2698_v16  ;;  %v1134_v34 = vadd.s32 280, %v2671_v2 }
  0xf2   : > { %v590_v35 = vadd.f32 %v553_v33, %v478_v31  ;;  %2024 = vmatpush3.bf16.msra.mxu0 %v2021_v29  ;;  %v1101_v29 = vadd.s32 16, %v2671_v2  ;;  %v1149_v31 = vadd.s32 400, %v2671_v2  ;;  %vm1202_vm14 = vcmp.eq.s32.totalorder %v1118_v28, %v2698_v16 }
  0xf3   : > { %v1133_v33 = vadd.s32 272, %v2671_v2  ;;  %vm2041_vm15 = vmpackc.low %vm1202_vm14, %vm1201_vm13  ;;  %vm1186_vm1 = vcmp.eq.s32.totalorder %v1102_v30, %v2698_v16  ;;  %v1120_v36 = vadd.s32 168, %v2671_v2  ;;  %v1104_v38 = vadd.s32 40, %v2671_v2 }
  0xf4   : > { %vm606_vm2 = vcmp.gt.f32.partialorder %v590_v35, 0.0  ;;  %v622_v37 = vmul.f32 0.1, %v590_v35  ;;  %v568_v45 = vpop.permute.xlu1 %567  ;;  %vm1185_vm0 = vcmp.eq.s32.totalorder %v1101_v29, %v2698_v16  ;;  %2042 = vmatprep.subr.msk.bf16.mxu1 %vm2041_vm15, %v2324_v27 }
  0xf5   : > { %v445_v39 = vpop.permute.xlu0 %444  ;;  %v593_v47 = vadd.f32 %v568_v45, %v481_v43  ;;  %vm1204_vm10 = vcmp.eq.s32.totalorder %v1120_v36, %v2698_v16  ;;  %vm1188_vm13 = vcmp.eq.s32.totalorder %v1104_v38, %v2698_v16  ;;  %v1121_v43 = vadd.s32 176, %v2671_v2 }
  0xf6   : > { %v638_v40 = vsel %vm606_vm2, %v590_v35, %v622_v37  ;;  %v480_v44 = vmul.f32 %v2695_v14, %v445_v39  ;;  %vm1233_vm2 = vcmp.eq.s32.totalorder %v1149_v31, %v2698_v16  ;;  %v1119_v35 = vadd.s32 160, %v2671_v2 }
  0xf7   : > { %v2025_v42 = vpack.c.bf16 %v639_v41, %v638_v40  ;;  %vm609_vm3 = vcmp.gt.f32.partialorder %v593_v47, 0.0  ;;  %v625_v49 = vmul.f32 0.1, %v593_v47  ;;  %v1103_v37 = vadd.s32 32, %v2671_v2 }
  0xf8   : > { %v460_v51 = vpop.permute.xlu1 %459  ;;  %v1151_v39 = vadd.s32 416, %v2671_v2  ;;  %v1152_v40 = vadd.s32 424, %v2671_v2  ;;  %v1135_v41 = vadd.s32 288, %v2671_v2  ;;  %v1105_v45 = vadd.s32 48, %v2671_v2 }
  0xf9   : > { %v563_v46 = vpop.permute.xlu0 %562  ;;  %2026 = vmatprep.subr.bf16.mxu0 %v2025_v42  ;;  %v641_v54 = vsel %vm609_vm3, %v593_v47, %v625_v49  ;;  %v483_v56 = vmul.f32 %v2695_v14, %v460_v51  ;;  %vm1234_vm3 = vcmp.eq.s32.totalorder %v1150_v32, %v2698_v16  ;;  %v1153_v47 = vadd.s32 432, %v2671_v2 }
  0xfa   : > { %v592_v48 = vadd.f32 %v563_v46, %v480_v44  ;;  %2028 = vmatpush3.bf16.msra.mxu0 %v2025_v42  ;;  %vm2073_vm7 = vmpackc.low %vm1234_vm3, %vm1233_vm2  ;;  %v1136_v42 = vadd.s32 296, %v2671_v2  ;;  %vm1235_vm14 = vcmp.eq.s32.totalorder %v1151_v39, %v2698_v16  ;;  %vm1236_vm15 = vcmp.eq.s32.totalorder %v1152_v40, %v2698_v16 }
  0xfb   : > { %vm2077_vm3 = vmpackc.low %vm1236_vm15, %vm1235_vm14  ;;  %v1122_v44 = vadd.s32 184, %v2671_v2  ;;  %v1106_v46 = vadd.s32 56, %v2671_v2  ;;  %v1137_v49 = vadd.s32 304, %v2671_v2  ;;  %v1123_v51 = vadd.s32 192, %v2671_v2 }
  0xfc   : > { %vm608_vm4 = vcmp.gt.f32.partialorder %v592_v48, 0.0  ;;  %v624_v50 = vmul.f32 0.1, %v592_v48  ;;  %v578_v58 = vpop.permute.xlu1 %577  ;;  %vm1220_vm2 = vcmp.eq.s32.totalorder %v1136_v42, %v2698_v16 }
  0xfd   : > { %v455_v52 = vpop.permute.xlu0 %454  ;;  %v595_v62 = vadd.f32 %v578_v58, %v483_v56  ;;  %v1156_v56 = vadd.s32 456, %v2671_v2  ;;  %v1140_v58 = vadd.s32 328, %v2671_v2 }
  0xfe   : > { %v640_v53 = vsel %vm608_vm4, %v592_v48, %v624_v50  ;;  %v482_v57 = vmul.f32 %v2695_v14, %v455_v52  ;;  %vm2043_vm4 = vmpackc.low %vm1186_vm1, %vm1185_vm0  ;;  %vm1219_vm1 = vcmp.eq.s32.totalorder %v1135_v41, %v2698_v16  ;;  %v1154_v48 = vadd.s32 440, %v2671_v2 }
  0xff   : > { %v2029_v55 = vpack.c.bf16 %v641_v54, %v640_v53  ;;  %vm611_vm5 = vcmp.gt.f32.partialorder %v595_v62, 0.0  ;;  %v627_v1 = vmul.f32 0.1, %v595_v62  ;;  %2044 = vmatpush3.bf16.xpose.msk.msra.mxu1 %vm2043_vm4, %v2324_v27  ;;  %vm2079_vm4 = vmpackc.low %vm1220_vm2, %vm1219_vm1  ;;  %v1138_v50 = vadd.s32 312, %v2671_v2 }
 0x100   : > { %v1124_v52 = vadd.s32 200, %v2671_v2  ;;  %v1107_v53 = vadd.s32 64, %v2671_v2  ;;  %v1108_v54 = vadd.s32 72, %v2671_v2  ;;  %vm1207_vm1 = vcmp.eq.s32.totalorder %v1123_v51, %v2698_v16 }
 0x101   : > { %v573_v59 = vpop.permute.xlu0 %572  ;;  %2030 = vmatprep.subr.bf16.mxu0 %v2029_v55  ;;  %v643_v14 = vsel %vm611_vm5, %v595_v62, %v627_v1  ;;  %vm1217_vm5 = vcmp.eq.s32.totalorder %v1133_v33, %v2698_v16  ;;  %vm1222_vm14 = vcmp.eq.s32.totalorder %v1138_v50, %v2698_v16  ;;  %v1110_v62 = vadd.s32 88, %v2671_v2 }
 0x102   : > { %v594_v0 = vadd.f32 %v573_v59, %v482_v57  ;;  %2032 = vmatpush3.bf16.msra.mxu0 %v2029_v55  ;;  %v1155_v55 = vadd.s32 448, %v2671_v2  ;;  %vm1208_vm2 = vcmp.eq.s32.totalorder %v1124_v52, %v2698_v16  ;;  %v1139_v57 = vadd.s32 320, %v2671_v2 }
 0x103   : > { %v1125_v59 = vadd.s32 208, %v2671_v2  ;;  %v1158_v1 = vadd.s32 472, %v2671_v2 }
 0x104   : > { %vm610_vm6 = vcmp.gt.f32.partialorder %v594_v0, 0.0  ;;  %v626_v3 = vmul.f32 0.1, %v594_v0 }
 0x106   : > { %v642_v4 = vsel %vm610_vm6, %v594_v0, %v626_v3  ;;  %vm1218_vm6 = vcmp.eq.s32.totalorder %v1134_v34, %v2698_v16  ;;  %v1157_v0 = vadd.s32 464, %v2671_v2  ;;  %v1141_v3 = vadd.s32 336, %v2671_v2 }
 0x107   : > { %v2033_v5 = vpack.c.bf16 %v643_v14, %v642_v4  ;;  %vm2075_vm8 = vmpackc.low %vm1218_vm6, %vm1217_vm5  ;;  %vm1205_vm5 = vcmp.eq.s32.totalorder %v1121_v43, %v2698_v16  ;;  %vm1206_vm6 = vcmp.eq.s32.totalorder %v1122_v44, %v2698_v16  ;;  %v1142_v4 = vadd.s32 344, %v2671_v2 }
 0x108   : > { %v1127_v14 = vadd.s32 224, %v2671_v2 }
 0x109   : > { %2034 = vmatprep.subr.bf16.mxu0 %v2033_v5 }
 0x10a   : > { %2036 = vmatpush3.bf16.msra.mxu0 %v2033_v5  ;;  %v1128_v5 = vadd.s32 232, %v2671_v2 }
 0x10b   : > { %2070 = vmatprep.subr.msk.bf16.mxu0 %vm2069_vm9, %v2324_v27  ;;  %vm1203_vm9 = vcmp.eq.s32.totalorder %v1119_v35, %v2698_v16 }
 0x10c   : > { %vm2045_vm11 = vmpackc.low %vm1204_vm10, %vm1203_vm9  ;;  %vm1190_vm9 = vcmp.eq.s32.totalorder %v1106_v46, %v2698_v16  ;;  %vm1237_vm10 = vcmp.eq.s32.totalorder %v1153_v47, %v2698_v16 }
 0x10d   : > { %1947 = vmatmul.mubr.f32.vlgmr.msra.gmra.mrb[0].mxu0 %v645_v8  ;;  %2046 = vmatprep.subr.msk.bf16.mxu1 %vm2045_vm11, %v2324_v27  ;;  %vm1238_vm11 = vcmp.eq.s32.totalorder %v1154_v48, %v2698_v16  ;;  %v1159_v8 = vadd.s32 480, %v2671_v2 }
 0x10e   : > { %1949 = vmatprep.mubr.f32.mxu0 %v646_v10  ;;  %vm2081_vm15 = vmpackc.low %vm1238_vm11, %vm1237_vm10  ;;  %vm1224_vm10 = vcmp.eq.s32.totalorder %v1140_v58, %v2698_v16  ;;  %v1160_v10 = vadd.s32 488, %v2671_v2 }
 0x111   : > { %1950 = vmatmul.mubr.f32.gmra.mrb[2].mxu0 %v647_v11  ;;  %v1143_v11 = vadd.s32 352, %v2671_v2 }
 0x112   : > { %1952 = vmatprep.mubr.f32.mxu0 %v648_v12  ;;  %v1144_v12 = vadd.s32 360, %v2671_v2 }
 0x113   : > { %2072 = vmatpush3.bf16.xpose.msk.msra.mxu0 %vm2071_vm12, %v2324_v27  ;;  %vm1187_vm12 = vcmp.eq.s32.totalorder %v1103_v37, %v2698_v16 }
 0x114   : > { %2074 = vmatprep.subr.msk.bf16.mxu0 %vm2073_vm7, %v2324_v27  ;;  %vm2047_vm0 = vmpackc.low %vm1188_vm13, %vm1187_vm12  ;;  %vm1221_vm13 = vcmp.eq.s32.totalorder %v1137_v49, %v2698_v16 }
 0x115   : > { %1953 = vmatmul.mubr.f32.gmra.mrb[4].mxu0 %v649_v13  ;;  %2048 = vmatpush3.bf16.xpose.msk.msra.mxu1 %vm2047_vm0, %v2324_v27  ;;  %vm2049_vm7 = vmpackc.low %vm1206_vm6, %vm1205_vm5  ;;  %vm1192_vm5 = vcmp.eq.s32.totalorder %v1108_v54, %v2698_v16  ;;  %vm1239_vm6 = vcmp.eq.s32.totalorder %v1155_v55, %v2698_v16  ;;  %v1129_v13 = vadd.s32 240, %v2671_v2 }
 0x116   : > { %1955 = vmatprep.mubr.f32.mxu0 %v650_v15  ;;  %2050 = vmatprep.subr.msk.bf16.mxu1 %vm2049_vm7, %v2324_v27  ;;  %vm2083_vm0 = vmpackc.low %vm1222_vm14, %vm1221_vm13  ;;  %vm1240_vm7 = vcmp.eq.s32.totalorder %v1156_v56, %v2698_v16  ;;  %vm1209_vm13 = vcmp.eq.s32.totalorder %v1125_v59, %v2698_v16  ;;  %vm1210_vm14 = vcmp.eq.s32.totalorder %v1126_v60, %v2698_v16  ;;  %v1130_v15 = vadd.s32 248, %v2671_v2 }
 0x117   : > { %vm2085_vm11 = vmpackc.low %vm1240_vm7, %vm1239_vm6  ;;  %vm1226_vm6 = vcmp.eq.s32.totalorder %v1142_v4, %v2698_v16 }
 0x119   : > { %1956 = vmatmul.mubr.f32.gmra.mrb[6].mxu0 %v651_v17  ;;  %v1113_v17 = vadd.s32 112, %v2671_v2 }
 0x11a   : > { %1958 = vmatprep.mubr.f32.mxu0 %v652_v18  ;;  %v1114_v18 = vadd.s32 120, %v2671_v2 }
 0x11b   : > { %2076 = vmatpush3.bf16.xpose.msk.msra.mxu0 %vm2075_vm8, %v2324_v27  ;;  %vm1189_vm8 = vcmp.eq.s32.totalorder %v1105_v45, %v2698_v16 }
 0x11c   : > { %2078 = vmatprep.subr.msk.bf16.mxu0 %vm2077_vm3, %v2324_v27  ;;  %vm2051_vm12 = vmpackc.low %vm1190_vm9, %vm1189_vm8  ;;  %vm1223_vm9 = vcmp.eq.s32.totalorder %v1139_v57, %v2698_v16 }
 0x11d   : > { %1959 = vmatmul.mubr.f32.gmra.mrb[8].mxu0 %v653_v19  ;;  %2052 = vmatpush3.bf16.xpose.msk.msra.mxu1 %vm2051_vm12, %v2324_v27  ;;  %vm2053_vm3 = vmpackc.low %vm1208_vm2, %vm1207_vm1  ;;  %vm1194_vm1 = vcmp.eq.s32.totalorder %v1110_v62, %v2698_v16  ;;  %vm1241_vm2 = vcmp.eq.s32.totalorder %v1157_v0, %v2698_v16  ;;  %v1161_v19 = vadd.s32 496, %v2671_v2 }
 0x11e   : > { %1961 = vmatprep.mubr.f32.mxu0 %v654_v20  ;;  %2054 = vmatprep.subr.msk.bf16.mxu1 %vm2053_vm3, %v2324_v27  ;;  %vm2087_vm12 = vmpackc.low %vm1224_vm10, %vm1223_vm9  ;;  %vm1242_vm3 = vcmp.eq.s32.totalorder %v1158_v1, %v2698_v16  ;;  %vm1211_vm9 = vcmp.eq.s32.totalorder %v1127_v14, %v2698_v16  ;;  %vm1212_vm10 = vcmp.eq.s32.totalorder %v1128_v5, %v2698_v16  ;;  %v1162_v20 = vadd.s32 504, %v2671_v2 }
 0x11f   : > { %vm2089_vm7 = vmpackc.low %vm1242_vm3, %vm1241_vm2  ;;  %vm1228_vm2 = vcmp.eq.s32.totalorder %v1144_v12, %v2698_v16 }
 0x121   : > { %1962 = vmatmul.mubr.f32.gmra.mrb[10].mxu0 %v655_v21  ;;  %v1145_v21 = vadd.s32 368, %v2671_v2 }
 0x122   : > { %1964 = vmatprep.mubr.f32.mxu0 %v656_v22  ;;  %v1146_v22 = vadd.s32 376, %v2671_v2 }
 0x123   : > { %2080 = vmatpush3.bf16.xpose.msk.msra.mxu0 %vm2079_vm4, %v2324_v27  ;;  %vm1191_vm4 = vcmp.eq.s32.totalorder %v1107_v53, %v2698_v16 }
 0x124   : > { %2082 = vmatprep.subr.msk.bf16.mxu0 %vm2081_vm15, %v2324_v27  ;;  %vm2055_vm8 = vmpackc.low %vm1192_vm5, %vm1191_vm4  ;;  %vm1225_vm5 = vcmp.eq.s32.totalorder %v1141_v3, %v2698_v16 }
 0x125   : > { %1965 = vmatmul.mubr.f32.gmra.mrb[12].mxu0 %v657_v23  ;;  %2056 = vmatpush3.bf16.xpose.msk.msra.mxu1 %vm2055_vm8, %v2324_v27  ;;  %vm2057_vm15 = vmpackc.low %vm1210_vm14, %vm1209_vm13  ;;  %vm1196_vm13 = vcmp.eq.s32.totalorder %v1112_v7, %v2698_v16  ;;  %vm1243_vm14 = vcmp.eq.s32.totalorder %v1159_v8, %v2698_v16  ;;  %v2325_v23 = vmov 0.0|0.0  }
 0x126   : > { %1967 = vmatprep.mubr.f32.mxu0 %v658_v24  ;;  %2058 = vmatprep.subr.msk.bf16.mxu1 %vm2057_vm15, %v2324_v27  ;;  %vm2091_vm8 = vmpackc.low %vm1226_vm6, %vm1225_vm5  ;;  %vm1244_vm15 = vcmp.eq.s32.totalorder %v1160_v10, %v2698_v16  ;;  %vm1213_vm5 = vcmp.eq.s32.totalorder %v1129_v13, %v2698_v16  ;;  %vm1214_vm6 = vcmp.eq.s32.totalorder %v1130_v15, %v2698_v16  ;;  %v679_v24 = vpop.permute.xlu0 %678 }
 0x127   : > { %vm2093_vm3 = vmpackc.low %vm1244_vm15, %vm1243_vm14  ;;  %vm1230_vm14 = vcmp.eq.s32.totalorder %v1146_v22, %v2698_v16 }
 0x129   : > { %1968 = vmatmul.mubr.f32.gmra.mrb[14].mxu0 %v659_v25  ;;  %v684_v25 = vpop.permute.xlu1 %683 }
 0x12a   : > { %v689_v26 = vpop.permute.xlu0 %688 }
 0x12b   : > { %2084 = vmatpush3.bf16.xpose.msk.msra.mxu0 %vm2083_vm0, %v2324_v27  ;;  %vm1193_vm0 = vcmp.eq.s32.totalorder %v1109_v61, %v2698_v16 }
 0x12c   : > { %2086 = vmatprep.subr.msk.bf16.mxu0 %vm2085_vm11, %v2324_v27  ;;  %vm2059_vm4 = vmpackc.low %vm1194_vm1, %vm1193_vm0  ;;  %vm1227_vm1 = vcmp.eq.s32.totalorder %v1143_v11, %v2698_v16 }
 0x12d   : > { %2060 = vmatpush3.bf16.xpose.msk.msra.mxu1 %vm2059_vm4, %v2324_v27  ;;  %vm2061_vm11 = vmpackc.low %vm1212_vm10, %vm1211_vm9  ;;  %vm1198_vm9 = vcmp.eq.s32.totalorder %v1114_v18, %v2698_v16  ;;  %vm1245_vm10 = vcmp.eq.s32.totalorder %v1161_v19, %v2698_v16  ;;  %v694_v28 = vpop.permute.xlu1 %693 }
 0x12e   : > { %2062 = vmatprep.subr.msk.bf16.mxu1 %vm2061_vm11, %v2324_v27  ;;  %vm2095_vm4 = vmpackc.low %vm1228_vm2, %vm1227_vm1  ;;  %vm1246_vm11 = vcmp.eq.s32.totalorder %v1162_v20, %v2698_v16  ;;  %v968_v29 = vpop.permute.xlu0 %967 }
 0x12f   : > { %vm2097_vm15 = vmpackc.low %vm1246_vm11, %vm1245_vm10 }
 0x131   : > { %v973_v30 = vpop.permute.xlu1 %972 }
 0x132   : > { %v699_v31 = vpop.permute.xlu0 %698 }
 0x133   : > { %2088 = vmatpush3.bf16.xpose.msk.msra.mxu0 %vm2087_vm12, %v2324_v27  ;;  %vm1195_vm12 = vcmp.eq.s32.totalorder %v1111_v6, %v2698_v16 }
 0x134   : > { %2090 = vmatprep.subr.msk.bf16.mxu0 %vm2089_vm7, %v2324_v27  ;;  %vm2063_vm0 = vmpackc.low %vm1196_vm13, %vm1195_vm12  ;;  %vm1229_vm13 = vcmp.eq.s32.totalorder %v1145_v21, %v2698_v16 }
 0x135   : > { %2064 = vmatpush3.bf16.xpose.msk.msra.mxu1 %vm2063_vm0, %v2324_v27  ;;  %vm2065_vm7 = vmpackc.low %vm1214_vm6, %vm1213_vm5  ;;  %v978_v32 = vpop.permute.xlu1 %977 }
 0x136   : > { %2066 = vmatprep.subr.msk.bf16.mxu1 %vm2065_vm7, %v2324_v27  ;;  %vm2099_vm0 = vmpackc.low %vm1230_vm14, %vm1229_vm13  ;;  %v704_v33 = vpop.permute.xlu0 %703 }
 0x139   : > { %v983_v34 = vpop.permute.xlu1 %982 }
 0x13a   : > { %v709_v35 = vpop.permute.xlu0 %708 }
 0x13b   : > { %2092 = vmatpush3.bf16.xpose.msk.msra.mxu0 %vm2091_vm8, %v2324_v27  ;;  %vm1197_vm8 = vcmp.eq.s32.totalorder %v1113_v17, %v2698_v16 }
 0x13c   : > { %2094 = vmatprep.subr.msk.bf16.mxu0 %vm2093_vm3, %v2324_v27  ;;  %vm2067_vm12 = vmpackc.low %vm1198_vm9, %vm1197_vm8 }
 0x13d   : > { %2068 = vmatpush3.bf16.xpose.msk.msra.mxu1 %vm2067_vm12, %v2324_v27  ;;  %v988_v36 = vpop.permute.xlu1 %987 }
 0x13e   : > { %2101 = vmatprep.subr.bf16.mxu1 %v2325_v23  ;;  %v714_v37 = vpop.permute.xlu0 %713 }
 0x141   : > { %v993_v38 = vpop.permute.xlu1 %992 }
 0x142   : > { %v2922_v39 = vpop.permute.xlu0 %718 }
 0x143   : > { %2096 = vmatpush3.bf16.xpose.msk.msra.mxu0 %vm2095_vm4, %v2324_v27 }
 0x144   : > { %2098 = vmatprep.subr.msk.bf16.mxu0 %vm2097_vm15, %v2324_v27 }
 0x145   : > { %v2924_v40 = vpop.permute.xlu1 %997 }
 0x146   : > { %v724_v41 = vpop.permute.xlu0 %723 }
 0x149   : > { %v2926_v42 = vpop.permute.xlu1 %1002 }
 0x14a   : > { %v2928_v43 = vpop.permute.xlu0 %728 }
 0x14b   : > { %2100 = vmatpush3.bf16.xpose.msk.msra.mxu0 %vm2099_vm0, %v2324_v27 }
 0x14d   : > { %v2930_v44 = vpop.permute.xlu1 %1007 }
 0x14e   : > { %v2932_v50 = vpop.permute.xlu0 %733 }
 0x151   : > { %v2934_v56 = vpop.permute.xlu1 %1012 }
 0x152   : > { %v2936_v14 = vpop.permute.xlu0 %738 }
 0x155   : > { %v1018_v11 = vpop.permute.xlu1 %1017 }
 0x1e0   : > { %v1948_v45 = vpop.f32.mrb[0].mxu0 }
 0x1e1   : > { %v828_v46 = vadd.f32 %v1948_v45, %v684_v25  ;;  %v822_v47 = vpop.f32.mrb[1].mxu0 }
 0x1e2   : > { %v823_v48 = vadd.f32 %v822_v47, %v679_v24 }
 0x1e3   : > { %vm902_vm1 = vcmp.gt.f32.partialorder %v828_v46, 0.0  ;;  %v918_v49 = vmul.f32 0.1, %v828_v46 }
 0x1e4   : > { %vm901_vm2 = vcmp.gt.f32.partialorder %v823_v48, 0.0  ;;  %v917_v51 = vmul.f32 0.1, %v823_v48  ;;  %v1951_v52 = vpop.f32.mrb[2].mxu0 }
 0x1e5   : > { %v934_v53 = vsel %vm902_vm1, %v828_v46, %v918_v49  ;;  %v838_v54 = vadd.f32 %v1951_v52, %v694_v28  ;;  %v832_v55 = vpop.f32.mrb[3].mxu0  ;;  %v744_v28 = vpop.permute.xlu0 %743 }
 0x1e6   : > { %v1046_v57 = vmul.f32 %v973_v30, %v934_v53  ;;  %v933_v58 = vsel %vm901_vm2, %v823_v48, %v917_v51  ;;  %v833_v59 = vadd.f32 %v832_v55, %v689_v26  ;;  %v1023_v46 = vpop.permute.xlu1 %1022 }
 0x1e7   : > { %v1045_v60 = vmul.f32 %v968_v29, %v933_v58  ;;  %vm904_vm3 = vcmp.gt.f32.partialorder %v838_v54, 0.0  ;;  %v920_v61 = vmul.f32 0.1, %v838_v54 }
 0x1e8   : > { %vm903_vm4 = vcmp.gt.f32.partialorder %v833_v59, 0.0  ;;  %v919_v62 = vmul.f32 0.1, %v833_v59  ;;  %v1954_v0 = vpop.f32.mrb[4].mxu0 }
 0x1e9   : > { %v1061_v1 = vadd.f32 %v1046_v57, %v1045_v60  ;;  %v848_v3 = vadd.f32 %v1954_v0, %v704_v33  ;;  %v842_v4 = vpop.f32.mrb[5].mxu0  ;;  %v936_v5 = vsel %vm904_vm3, %v838_v54, %v920_v61  ;;  %v749_v54 = vpop.permute.xlu0 %748 }
 0x1ea   : > { %v935_v6 = vsel %vm903_vm4, %v833_v59, %v919_v62  ;;  %v843_v7 = vadd.f32 %v842_v4, %v699_v31  ;;  %v1048_v15 = vmul.f32 %v983_v34, %v936_v5  ;;  %v1028_v60 = vpop.permute.xlu1 %1027  ;;  %vm2326_vm4 = vmmov 0  }
 0x1eb   : > { %v1047_v8 = vmul.f32 %v978_v32, %v935_v6  ;;  %vm906_vm5 = vcmp.gt.f32.partialorder %v848_v3, 0.0  ;;  %v922_v10 = vmul.f32 0.1, %v848_v3 }
 0x1ec   : > { %vm905_vm6 = vcmp.gt.f32.partialorder %v843_v7, 0.0  ;;  %v921_v12 = vmul.f32 0.1, %v843_v7  ;;  %v1957_v13 = vpop.f32.mrb[6].mxu0 }
 0x1ed   : > { %v1062_v17 = vadd.f32 %v1061_v1, %v1047_v8  ;;  %v858_v18 = vadd.f32 %v1957_v13, %v714_v37  ;;  %v852_v19 = vpop.f32.mrb[7].mxu0  ;;  %v938_v20 = vsel %vm906_vm5, %v848_v3, %v922_v10 }
 0x1ee   : > { %v937_v21 = vsel %vm905_vm6, %v843_v7, %v921_v12  ;;  %v853_v22 = vadd.f32 %v852_v19, %v709_v35  ;;  %v1050_v31 = vmul.f32 %v993_v38, %v938_v20  ;;  %v754_v7 = vpop.permute.xlu0 %753 }
 0x1ef   : > { %v1049_v24 = vmul.f32 %v988_v36, %v937_v21  ;;  %v1063_v25 = vadd.f32 %v1062_v17, %v1048_v15  ;;  %vm908_vm7 = vcmp.gt.f32.partialorder %v858_v18, 0.0  ;;  %v924_v26 = vmul.f32 0.1, %v858_v18 }
 0x1f0   : > { %vm907_vm8 = vcmp.gt.f32.partialorder %v853_v22, 0.0  ;;  %v923_v29 = vmul.f32 0.1, %v853_v22  ;;  %v1960_v30 = vpop.f32.mrb[8].mxu0 }
 0x1f1   : > { %v1064_v32 = vadd.f32 %v1063_v25, %v1049_v24  ;;  %v868_v33 = vadd.f32 %v1960_v30, %v724_v41  ;;  %v862_v45 = vpop.f32.mrb[9].mxu0  ;;  %v940_v34 = vsel %vm908_vm7, %v858_v18, %v924_v26 }
 0x1f2   : > { %v939_v47 = vsel %vm907_vm8, %v853_v22, %v923_v29  ;;  %v863_v37 = vadd.f32 %v862_v45, %v2922_v39  ;;  %v1052_v52 = vmul.f32 %v2926_v42, %v940_v34  ;;  %v1038_v26 = vpop.permute.xlu0 %1037 }
 0x1f3   : > { %v1051_v48 = vmul.f32 %v2924_v40, %v939_v47  ;;  %v1065_v35 = vadd.f32 %v1064_v32, %v1050_v31  ;;  %vm910_vm9 = vcmp.gt.f32.partialorder %v868_v33, 0.0  ;;  %v926_v36 = vmul.f32 0.1, %v868_v33 }
 0x1f4   : > { %vm909_vm10 = vcmp.gt.f32.partialorder %v863_v37, 0.0  ;;  %v925_v49 = vmul.f32 0.1, %v863_v37  ;;  %v1963_v51 = vpop.f32.mrb[10].mxu0 }
 0x1f5   : > { %v1066_v53 = vadd.f32 %v1065_v35, %v1051_v48  ;;  %v878_v38 = vadd.f32 %v1963_v51, %v2932_v50  ;;  %v872_v41 = vpop.f32.mrb[11].mxu0  ;;  %v942_v55 = vsel %vm910_vm9, %v868_v33, %v926_v36  ;;  %v1164_v51 = vadd.s32 520, %v2671_v2 }
 0x1f6   : > { %v941_v57 = vsel %vm909_vm10, %v863_v37, %v925_v49  ;;  %v873_v58 = vadd.f32 %v872_v41, %v2928_v43  ;;  %v1054_v42 = vmul.f32 %v2934_v56, %v942_v55  ;;  %v1033_v56 = vpop.permute.xlu1 %1032  ;;  %v1086_v35 = vpop.permute.xlu0 %1085  ;;  %v1163_v49 = vadd.s32 512, %v2671_v2  ;;  %v2210_v41 = vld [vmem:[%s2467_s26] sm:$0x1] }
 0x1f7   : > { %v1053_v39 = vmul.f32 %v2930_v44, %v941_v57  ;;  %v1067_v40 = vadd.f32 %v1066_v53, %v1052_v52  ;;  %vm912_vm11 = vcmp.gt.f32.partialorder %v878_v38, 0.0  ;;  %v928_v59 = vmul.f32 0.1, %v878_v38 }
 0x1f8   : > { %vm911_vm12 = vcmp.gt.f32.partialorder %v873_v58, 0.0  ;;  %v927_v61 = vmul.f32 0.1, %v873_v58  ;;  %v1966_v62 = vpop.f32.mrb[12].mxu0  ;;  %v1091_v52 = vrot.slane %v1086_v35, %v2686_v9  ;;  %vm1247_vm1 = vcmp.eq.s32.totalorder %v1163_v49, %v2698_v16 }
 0x1f9   : > { %v1068_v0 = vadd.f32 %v1067_v40, %v1053_v39  ;;  %v888_v1 = vadd.f32 %v1966_v62, %v744_v28  ;;  %v882_v50 = vpop.f32.mrb[13].mxu0  ;;  %v944_v3 = vsel %vm912_vm11, %v878_v38, %v928_v59  ;;  %vm1248_vm2 = vcmp.eq.s32.totalorder %v1164_v51, %v2698_v16 }
 0x1fa   : > { %v943_v4 = vsel %vm911_vm12, %v873_v58, %v927_v61  ;;  %v883_v5 = vadd.f32 %v882_v50, %v2936_v14  ;;  %v1056_v12 = vmul.f32 %v1023_v46, %v944_v3  ;;  %v1043_v32 = vpop.permute.xlu1 %1042  ;;  %vm2102_vm3 = vmpackc.low %vm1248_vm2, %vm1247_vm1  ;;  %v1165_v55 = vadd.s32 528, %v2671_v2 }
 0x1fb   : > { %v1055_v6 = vmul.f32 %v1018_v11, %v943_v4  ;;  %v1069_v43 = vadd.f32 %v1068_v0, %v1054_v42  ;;  %vm914_vm13 = vcmp.gt.f32.partialorder %v888_v1, 0.0  ;;  %v930_v44 = vmul.f32 0.1, %v888_v1 }
 0x1fc   : > { %vm913_vm14 = vcmp.gt.f32.partialorder %v883_v5, 0.0  ;;  %v929_v8 = vmul.f32 0.1, %v883_v5  ;;  %v1969_v10 = vpop.f32.mrb[14].mxu0  ;;  %v1166_v57 = vadd.s32 536, %v2671_v2  ;;  %v2327_v9 = vmov 0.0  }
 0x1fd   : > { %v1070_v13 = vadd.f32 %v1069_v43, %v1055_v6  ;;  %v898_v15 = vadd.f32 %v1969_v10, %v754_v7  ;;  %v892_v17 = vpop.f32.mrb[15].mxu0  ;;  %v946_v18 = vsel %vm914_vm13, %v888_v1, %v930_v44  ;;  %vm1249_vm5 = vcmp.eq.s32.totalorder %v1165_v55, %v2698_v16 }
 0x1fe   : > { %v945_v19 = vsel %vm913_vm14, %v883_v5, %v929_v8  ;;  %v893_v20 = vadd.f32 %v892_v17, %v749_v54  ;;  %v1058_v24 = vmul.f32 %v1033_v56, %v946_v18  ;;  %vm1250_vm6 = vcmp.eq.s32.totalorder %v1166_v57, %v2698_v16 }
 0x1ff   : > { %v1057_v21 = vmul.f32 %v1028_v60, %v945_v19  ;;  %v1071_v22 = vadd.f32 %v1070_v13, %v1056_v12  ;;  %vm916_vm15 = vcmp.gt.f32.partialorder %v898_v15, 0.0  ;;  %v932_v14 = vmul.f32 0.1, %v898_v15  ;;  %vm2105_vm7 = vmpackc.low %vm1250_vm6, %vm1249_vm5 }
 0x200   : > { %vm915_vm0 = vcmp.gt.f32.partialorder %v893_v20, 0.0  ;;  %v931_v11 = vmul.f32 0.1, %v893_v20  ;;  %v1167_v58 = vadd.s32 544, %v2671_v2  ;;  %v1168_v39 = vadd.s32 552, %v2671_v2 }
 0x201   : > { %v1072_v25 = vadd.f32 %v1071_v22, %v1057_v21  ;;  %v948_v28 = vsel %vm916_vm15, %v898_v15, %v932_v14  ;;  %v1169_v40 = vadd.s32 560, %v2671_v2  ;;  %v1170_v59 = vadd.s32 568, %v2671_v2 }
 0x202   : > { %v947_v29 = vsel %vm915_vm0, %v893_v20, %v931_v11  ;;  %v1060_v33 = vmul.f32 %v1043_v32, %v948_v28  ;;  %vm1251_vm8 = vcmp.eq.s32.totalorder %v1167_v58, %v2698_v16  ;;  %vm1252_vm9 = vcmp.eq.s32.totalorder %v1168_v39, %v2698_v16  ;;  %v1555_v20 = vld [vmem:[%s2482_s23] sm:$0x1f] }
 0x203   : > { %v1059_v30 = vmul.f32 %v1038_v26, %v947_v29  ;;  %v1073_v31 = vadd.f32 %v1072_v25, %v1058_v24  ;;  %vm2108_vm10 = vmpackc.low %vm1252_vm9, %vm1251_vm8  ;;  %vm1253_vm11 = vcmp.eq.s32.totalorder %v1169_v40, %v2698_v16  ;;  %vm1254_vm12 = vcmp.eq.s32.totalorder %v1170_v59, %v2698_v16 }
 0x204   : > { %vm2111_vm13 = vmpackc.low %vm1254_vm12, %vm1253_vm11  ;;  %v1171_v60 = vadd.s32 576, %v2671_v2  ;;  %v1172_v61 = vadd.s32 584, %v2671_v2  ;;  %v1173_v62 = vadd.s32 592, %v2671_v2  ;;  %v1174_v42 = vadd.s32 600, %v2671_v2 }
 0x205   : > { %v1074_v45 = vadd.f32 %v1073_v31, %v1059_v30  ;;  %v1175_v0 = vadd.s32 608, %v2671_v2  ;;  %v1176_v1 = vadd.s32 616, %v2671_v2  ;;  %v1177_v50 = vadd.s32 624, %v2671_v2 }
 0x206   : > { %vm1255_vm14 = vcmp.eq.s32.totalorder %v1171_v60, %v2698_v16  ;;  %vm1256_vm15 = vcmp.eq.s32.totalorder %v1172_v61, %v2698_v16  ;;  %vm1257_vm1 = vcmp.eq.s32.totalorder %v1173_v62, %v2698_v16  ;;  %vm1258_vm2 = vcmp.eq.s32.totalorder %v1174_v42, %v2698_v16 }
 0x207   : > { %v1075_v46 = vadd.f32 %v1074_v45, %v1060_v33  ;;  %vm2114_vm0 = vmpackc.low %vm1256_vm15, %vm1255_vm14  ;;  %vm1260_vm5 = vcmp.eq.s32.totalorder %v1176_v1, %v2698_v16  ;;  %v1178_v3 = vadd.s32 632, %v2671_v2  ;;  %v2328_v4 = vmov 1966171168  }
 0x208   : > { %v1564_v5 = vunpack.c.l.s4 %v2328_v4 }
 0x209   : > { %v1076_v34 = vrot.slane %v1075_v46, 4  ;;  %vm1262_vm8 = vcmp.eq.s32.totalorder %v1178_v3, %v2698_v16 }
 0x20a   : > { %v1565_v6 = vunpack.c.0.s8 %v1564_v5 }
 0x20b   : > { %v1077_v47 = vadd.f32 %v1076_v34, %v1075_v46 }
 0x20c   : > { %v1568_v44 = vsub.s32 %v1565_v6, %v2671_v2 }
 0x20d   : > { %v1078_v37 = vrot.slane %v1077_v47, 2 }
 0x20f   : > { %v1079_v48 = vadd.f32 %v1078_v37, %v1077_v47 }
 0x211   : > { %v1080_v36 = vrot.slane %v1079_v48, 1 }
 0x213   : > { %v1081_v53 = vadd.f32 %v1080_v36, %v1079_v48 }
 0x215   : > { %v1092_v38 = vadd.f32 %v1091_v52, %v1081_v53 }
 0x217   : > { %v1093_v54 = vmul.f32 %v2210_v41, %v1092_v38 }
 0x219   : > { %1861 = vmatprep.mubr.f32.mxu1 %v1093_v54  ;;  %1895 = vmatprep.mubr.f32.mxu0 %v1093_v54 }
 0x21a   : > { %1862 = vmatmul.mubr.f32.vlgmr.msra.gmra.mrb[0].mxu1 %v1093_v54  ;;  %1896 = vmatmul.mubr.f32.vlgmr.msra.gmra.mrb[16].mxu0 %v1093_v54 }
 0x21b   : > { %2103 = vmatpush3.bf16.xpose.msk.msra.mxu1 %vm2102_vm3, %v2324_v27  ;;  %2002 = vmatprep.mubr.msk.f32.mxu1 %vm2326_vm4, %v2327_v9  ;;  %vm2117_vm3 = vmpackc.low %vm1258_vm2, %vm1257_vm1  ;;  %vm1259_vm4 = vcmp.eq.s32.totalorder %v1175_v0, %v2698_v16 }
 0x21c   : > { %2104 = vmatprep.subr.bf16.mxu1 %v2325_v23  ;;  %vm2120_vm6 = vmpackc.low %vm1260_vm5, %vm1259_vm4 }
 0x223   : > { %2106 = vmatpush3.bf16.xpose.msk.msra.mxu1 %vm2105_vm7, %v2324_v27  ;;  %vm1261_vm7 = vcmp.eq.s32.totalorder %v1177_v50, %v2698_v16 }
 0x224   : > { %2107 = vmatprep.subr.bf16.mxu1 %v2325_v23  ;;  %vm2123_vm9 = vmpackc.low %vm1262_vm8, %vm1261_vm7 }
 0x22b   : > { %2109 = vmatpush3.bf16.xpose.msk.msra.mxu1 %vm2108_vm10, %v2324_v27  ;;  %vm1604_vm10 = vcmp.lt.s32.totalorder %v463_v63, 640 }
 0x22c   : > { %2110 = vmatprep.subr.bf16.mxu1 %v2325_v23 }
 0x233   : > { %2112 = vmatpush3.bf16.xpose.msk.msra.mxu1 %vm2111_vm13, %v2324_v27 }
 0x234   : > { %2113 = vmatprep.subr.bf16.mxu1 %v2325_v23 }
 0x23b   : > { %2115 = vmatpush3.bf16.xpose.msk.msra.mxu1 %vm2114_vm0, %v2324_v27 }
 0x23c   : > { %2116 = vmatprep.subr.bf16.mxu1 %v2325_v23 }
 0x243   : > { %2118 = vmatpush3.bf16.xpose.msk.msra.mxu1 %vm2117_vm3, %v2324_v27 }
 0x244   : > { %2119 = vmatprep.subr.bf16.mxu1 %v2325_v23 }
 0x24b   : > { %2121 = vmatpush3.bf16.xpose.msk.msra.mxu1 %vm2120_vm6, %v2324_v27 }
 0x24c   : > { %2122 = vmatprep.subr.bf16.mxu1 %v2325_v23 }
 0x253   : > { %2124 = vmatpush3.bf16.xpose.msk.msra.mxu1 %vm2123_vm9, %v2324_v27 }
 0x25a   : > { %2003 = vmatmul.mubr.f32.vlgmr.msra.gmra.mrb[2].mxu1 %v1093_v54 }
 0x2ed   : > { %v1409_v43 = vpop.f32.mrb[0].mxu1  ;;  %v1480_v23 = vpop.f32.mrb[16].mxu0 }
 0x2ee   : > { %v1411_v7 = vpop.f32.mrb[1].mxu1  ;;  %v1482_v16 = vpop.f32.mrb[17].mxu0 }
 0x2ef   : > { %v1561_v8 = vcombine.low %v1409_v43, %v1411_v7  ;;  %v1562_v27 = vcombine.low %v1480_v23, %v1482_v16 }
 0x2f1   : > { %v1569_v10 = vrot.slane %v1561_v8, %v1568_v44  ;;  %v1576_v12 = vrot.slane %v1562_v27, %v1568_v44 }
 0x2f3   : > { %v1584_v13 = vcombine.low %v1569_v10, %v1576_v12 }
 0x2f5   : > { %v1591_v18 = vrot.slane %v1584_v13, %v1568_v44 }
 0x32d   : > { %v1551_v15 = vpop.f32.mrb[2].mxu1 }
 0x32e   : > { %v1583_v17 = vrot.slane %v1551_v15, %v1568_v44  ;;  %v2004_v56 = vpop.f32.mrb[3].mxu1 }
 0x330   : > { %v1598_v19 = vrot.slane %v1583_v17, %v1568_v44  ;;  %1611 = sbr.rel (%p2998_p3) target bundleno = 833 (0x341), region = 60 }
 0x332   : > { %v1599_v21 = vcombine.low %v1591_v18, %v1598_v19 }
 0x334   : > { %v1601_v22 = vadd.f32 %v1599_v21, %v1555_v20 }
 0x336   : > { %1606 = vst.msk [vmem:[%s2482_s23] sm:$0x1f] %vm1604_vm10, %v1601_v22 }
 0x33d   : > { %v1612_v2 = vld [vmem:[%s2482_s23] sm:$0x1f] }
 0x33e   : > { %v1614_v14 = vmul.f32 0.01, %v1612_v2 }
 0x340   : > { %1615 = vst.msk [vmem:[%s2482_s23] sm:$0x1f] %vm1604_vm10, %v1614_v14 }
 0x341 PF: > { %s2127_s17 = scalar_select %p2438_p11, [#allocation3], [#allocation7] }
 0x342   : > { %s3112_s18 = smov (!%p2438_p11, %s2307_s18), 0  ;;  %s1632_s20 = sshll.u32 %s2482_s23, 4  ;;  %s3016_s20 = int_to_ptr.vmem [resolvable:$true] %s1632_s20 }
 0x343   : > { %s1624_s22 = sld [smem:[%s2127_s17 + %s3112_s18]]  ;;  %s3092_s13 = sand.u32 1, %s2295_s16  }
 0x344   : > { %s1617_s14 = scalar_lea.sflag [#allocation6], %s3092_s13  ;;  %s2223_s10 = scalar_lea.vmem %s3016_s20, 80 }
 0x345   : > { %p2224_p4 = scmp.ne.s32.totalorder %s3016_s20, %s2223_s10  ;;  %s2329_s12 = smov [#allocation5]  }
 0x346   : > { %s2227_s18 = sshll.u32 %s2329_s12, 4  ;;  %s2228_s18 = int_to_ptr.vmem [resolvable:$false] %s2227_s18 }
 0x347   : > { %p2225_p5 = pnand %p2224_p4, %p2438_p11  ;;  %s2229_s23 = scalar_lea.vmem %s2228_s18, 160 }
 0x348   : > { %p2230_p7 = scmp.lt.s32.totalorder %s3016_s20, %s2228_s18  ;;  %p2231_p8 = scmp.lt.s32.totalorder %s2229_s23, %s2223_s10 }
 0x349   : > { %s2126_s25 = smul.u32 80, %s1624_s22  ;;  %p2226_p6 = pneg %p2225_p5 }
 0x34a   : > { %p2232_p9 = por %p2231_p8, %p2230_p7 }
 0x34b   : > { %s1630_s3 = scalar_lea.hbm %s3075_s9, %s2126_s25 }
 0x34c   : > { %p2233_p10 = pnand %p2232_p9, %p2226_p6 }
 0x34e   : > { %2236 = shalt.err (!%p2233_p10)
}
 0x34f   : > { %s2237_s29 = scalar_lea.hbm %s1630_s3, 80  ;;  %s2241_s26 = scalar_lea.hbm %s3075_s9, 160 }
 0x350   : > { %p2238_p12 = scmp.ne.s32.totalorder %s1630_s3, %s2237_s29  ;;  %p2242_p2 = scmp.lt.u32.totalorder %s1630_s3, %s3075_s9 }
 0x351   : > { %p2243_p3 = scmp.lt.u32.totalorder %s2241_s26, %s2237_s29  ;;  %p2245_p5 = scmp.lt.u32.totalorder %s2237_s29, %s1630_s3 }
 0x352   : > { %p2239_p0 = pnand %p2238_p12, %p2438_p11 }
 0x353   : > { %p2244_p4 = por %p2243_p3, %p2242_p2 }
 0x354   : > { %p2240_p1 = pneg %p2239_p0 }
 0x355   : > { %p2246_p7 = por %p2245_p5, %p2244_p4 }
 0x357   : > { %p2247_p6 = pnand %p2246_p7, %p2240_p1 }
 0x359   : > { %2250 = shalt.err (!%p2247_p6)
}
 0x35a   : > { %2129 = dma.vmem_to_hbm [thread:$0]  (%p2438_p11), %s3016_s20, 80, %s1630_s3, %s1617_s14  }
 0x35b PF: > { %p2135_p8 = scmp.ge.s32.totalorder %s2319_s21, 2  ;;  %s1644_s25 = sand.u32 1, %s2291_s0  }
 0x35c   : > { %s1645_s24 = scalar_lea.sflag [#allocation6], %s1644_s25 }
 0x35d   : > { %p2132_p9 = pnand %p2135_p8, %p2445_p13 }
 0x35f   : > { %2286 = dma.done.wait (!%p2132_p9), %s1645_s24, 80  }
 0x360   : > { %2288 = vsyncadd (!%p2132_p9), %s1645_s24, 4294967216  ;;  %s30_s21 = sadd.s32 1, %s2319_s21   ;;  %s3093_s18 = sld [smem:[#allocation10_spill]] }
 0x361   : > { %p27_p10 = scmp.ge.s32.totalorder %s30_s21, 10   ;;  %s3094_s27 = sld [smem:[#allocation11_spill]] }
 0x362   : > { %s3095_s20 = sld [smem:[#allocation12_spill]]  ;;  %s3096_s0 = smov %s2295_s16 }
 0x363   : > { %s3097_s16 = smov %s2299_s8  ;;  %s3098_s8 = smov %s2453_s11 }
 0x364   : > { %s3099_s17 = smov %s2311_s19  ;;  %29 = sbr.rel (!%p27_p10) target bundleno = 21 (0x15), region = 98 }
 0x367   : > { %s3100_s19 = smov %s3094_s27 }
 0x36b   :  { %1650 = vsyncpa [#allocation6], 1 }
 0x36c   :  { %1652 = vsyncpa [#allocation6 + $0x1], 1 }

</bundles_post_ra>
